<compile_context>
chip_gen: v7x
topology: tpu7x:2x2x1
jax: 0.10.0
libtpu: 0.0.40
codegen_flags: <defaults>
</compile_context>

<pallas_src>
import functools

import jax
import jax.numpy as jnp
from jax import lax
from jax.experimental import pallas as pl
from jax.experimental.pallas import tpu as pltpu


def _round_up(x, m):
    return (x + m - 1) // m * m


def _vmem_budget_bytes():
    """Generation-aware scoped-VMEM budget (also used as vmem_limit_bytes)."""
    try:
        cap = int(getattr(pltpu.get_tpu_info(), "vmem_capacity_bytes",
                          64 * 1024 * 1024))
    except Exception:  # CPU tracing / interpret mode / older runtimes
        cap = 64 * 1024 * 1024
    if cap >= 100 * 1024 * 1024:      # v5e / v6e: 128 MiB physical per core
        return 64 * 1024 * 1024
    return 44 * 1024 * 1024           # v7x-class: 64 MiB per TC, leave headroom


def _vmem_estimate(tb, tn, D, K, x_item):
    """Conservative working-set estimate for one grid step (double-buffered)."""
    return (2 * tb * D * tn * x_item                 # x block, double-buffered
            + 2 * tb * D * K * 4                     # out block, double-buffered
            + 2 * K * D * x_item                     # score weight (resident)
            + 2 * D * K * 4                          # centers (resident)
            + tb * D * K * 4                         # agg scratch
            + tb * 8 * _round_up(K, 128) * 4         # ssum scratch (padded)
            + tb * K * tn * (3 * 4 + x_item)         # s / exp / p (f32) + cast p
            + tb * K * D * x_item                    # in-kernel weight broadcast
            + 2 * tb * D * K * 4)                    # desc temporaries, last step


def _pick_tiles(B, D, N, K, x_item, budget, batch_tile=None, n_tile=None,
                tn_cap=2048):
    """Pick (TB, TN, Np): batch tile, point tile (mult. of 128), padded N."""
    n128 = _round_up(max(N, 1), 128)
    if n_tile is not None:
        TN = _round_up(n_tile, 128)
    else:
        n_steps = -(-n128 // tn_cap)                       # ceil
        TN = _round_up(-(-n128 // n_steps), 128)
        while TN > 128 and _vmem_estimate(1, TN, D, K, x_item) > budget:
            TN -= 128                                      # shrink until TB=1 fits
    Np = _round_up(N, TN)
    n_steps = Np // TN

    if batch_tile is not None:
        TB = batch_tile
    else:
        cands = [tb for tb in range(1, B + 1) if B % tb == 0]
        feas = [tb for tb in cands
                if (B < 2 or B // tb >= 2)                 # >=2 batch steps: keep
                and _vmem_estimate(tb, TN, D, K, x_item) <= budget]  # both v7x TCs busy
        if not feas:
            feas = [1]
        # Prefer >=4 total grid steps (>=2 per TC on v7x) so the pipeline can
        # actually prefetch; among those, take the largest tile (biggest DMAs).
        pref = [tb for tb in feas if (B // tb) * n_steps >= 4]
        TB = max(pref) if pref else max(feas)
    return TB, TN, Np


def _netvlad_kernel(x_ref, w_ref, c_ref, out_ref, agg_ref, ssum_ref, *,
                    n_valid, n_padded, intranorm, matmul_dtype):
    # x_ref:    (TB, D, TN)  batch/point tile of inputs, matmul dtype (bf16)
    # w_ref:    (K, D)       score projection weight (Conv1d k=1, no bias)
    # c_ref:    (D, K)       cluster centers, natural torch layout, f32
    # out_ref:  (TB, D, K)   normalized descriptor (torch layout; free reshape)
    # agg_ref:  (TB, D, K)   f32 accumulator of sum_n p[b,k,n] * x[b,d,n]
    # ssum_ref: (TB, 1, K)   f32 accumulator of sum_n p[b,k,n]
    TB, D, TN = x_ref.shape
    K = w_ref.shape[0]
    n_idx = pl.program_id(1)

    @pl.when(n_idx == 0)
    def _init():
        agg_ref[...] = jnp.zeros_like(agg_ref)
        ssum_ref[...] = jnp.zeros_like(ssum_ref)

    xm = x_ref[...]                                        # (TB, D, TN), matmul dtype
    wm = w_ref[...]                                        # (K, D), matmul dtype

    # scores[b,k,n] = sum_d w[k,d] * x[b,d,n]  -> (TB, K, TN), f32 accumulate.
    # NOTE: per-step broadcast of the (small) weight is VPU filler hidden under
    # the x DMA (kernel is HBM-bound); left as-is per review (low priority).
    wb = jnp.broadcast_to(wm[None], (TB, K, D))
    s = lax.dot_general(wb, xm, (((2,), (1,)), ((0,), (0,))),
                        preferred_element_type=jnp.float32)

    # Softmax over the cluster axis K (axis=1), independently per point column.
    m = jnp.max(s, axis=1, keepdims=True)                  # (TB, 1, TN)
    e = jnp.exp(s - m)
    denom = jnp.sum(e, axis=1, keepdims=True)              # (TB, 1, TN)
    if jnp.dtype(matmul_dtype) == jnp.dtype(jnp.float32):
        p = e / denom                                      # exact on the f32 path
    else:
        p = e * pl.reciprocal(denom, approx=True)          # EUP divide, fast path

    if n_padded > n_valid:                                 # mask padded points
        col = n_idx * TN + lax.broadcasted_iota(jnp.int32, (1, 1, TN), 2)
        p = jnp.where(col < n_valid, p, 0.0)

    # Accumulate soft-assignment mass per cluster in (TB, 1, K) layout.
    ssum_ref[...] += jnp.sum(p, axis=2)[:, None, :]

    # agg[b,d,k] += sum_n x[b,d,n] * p[b,k,n]   (batched NT matmul, f32 acc)
    pm = p.astype(matmul_dtype)
    agg_ref[...] += lax.dot_general(xm, pm, (((2,), (2,)), ((0,), (0,))),
                                    preferred_element_type=jnp.float32)

    @pl.when(n_idx == pl.num_programs(1) - 1)
    def _finalize():
        ct = c_ref[...]                                    # (D, K), f32
        # desc[b,d,k] = sum_n p (x - c) = agg - c * ssum
        # NOTE: two-term form can cancel in bf16 when x ~= centers (review
        # concern #2); acceptable at current accuracy targets.
        desc = agg_ref[...] - ct[None] * ssum_ref[...]     # (TB, D, K), f32

        if intranorm:  # F.normalize over D per (b, k); eps on the squared sum
            ssq = jnp.sum(desc * desc, axis=1, keepdims=True)      # (TB, 1, K)
            desc = desc * lax.rsqrt(jnp.maximum(ssq, 1e-24))

        # Global L2 normalize over the flattened (D*K) descriptor per sample.
        gsq = jnp.sum(jnp.sum(desc * desc, axis=2, keepdims=True),
                      axis=1, keepdims=True)                       # (TB, 1, 1)
        desc = desc * lax.rsqrt(jnp.maximum(gsq, 1e-24))

        out_ref[...] = desc.astype(out_ref.dtype)


def netvlad_forward(x, score_w, centers, *, intranorm=True,
                    matmul_dtype=jnp.bfloat16, batch_tile=None, n_tile=None):
    """x: (B, D, N); score_w: (K, D); centers: (D, K) -> (B, D*K) float32."""
    B, D, N = x.shape
    K = score_w.shape[0]
    assert score_w.shape == (K, D)
    assert centers.shape == (D, K)

    budget = _vmem_budget_bytes()
    x_item = jnp.dtype(matmul_dtype).itemsize
    TB, TN, Np = _pick_tiles(B, D, N, K, x_item, budget, batch_tile, n_tile)
    assert B % TB == 0 and Np % TN == 0

    # Feed x in the MXU dtype so the dominant HBM read (and the x VMEM tile)
    # is half-width.  TODO(synk): have the upstream backbone emit bf16 so this
    # cast (and the padding when N % TN != 0) disappears entirely.
    if x.dtype != matmul_dtype:
        x = x.astype(matmul_dtype)
    if Np != N:
        x = jnp.pad(x, ((0, 0), (0, 0), (0, Np - N)))
    w = score_w.astype(matmul_dtype)
    c = centers.astype(jnp.float32)

    kernel = functools.partial(_netvlad_kernel, n_valid=N, n_padded=Np,
                               intranorm=intranorm, matmul_dtype=matmul_dtype)

    out = pl.pallas_call(
        kernel,
        out_shape=jax.ShapeDtypeStruct((B, D, K), jnp.float32),
        grid_spec=pltpu.PrefetchScalarGridSpec(
            num_scalar_prefetch=0,
            grid=(B // TB, Np // TN),
            in_specs=[
                pl.BlockSpec((TB, D, TN), lambda b, n: (b, 0, n)),
                # Constant index maps: weight / centers are DMA'd once and stay
                # resident across the whole grid.
                pl.BlockSpec((K, D), lambda b, n: (0, 0)),
                pl.BlockSpec((D, K), lambda b, n: (0, 0)),
            ],
            # Output block constant across the N (reduction) axis -> resident
            # accumulator; written once on the last N step.
            out_specs=pl.BlockSpec((TB, D, K), lambda b, n: (b, 0, 0)),
            scratch_shapes=[
                pltpu.VMEM((TB, D, K), jnp.float32),   # agg accumulator
                pltpu.VMEM((TB, 1, K), jnp.float32),   # soft-assignment mass
            ],
        ),
        compiler_params=pltpu.CompilerParams(
            dimension_semantics=("parallel", "arbitrary"),
            vmem_limit_bytes=int(budget),
        ),
    )(x, w, c)

    # out[b, d, k] is already the torch (B, D, K) descriptor; .view(b, -1) is a
    # free contiguous reshape here (no transpose / HBM round trip).
    return out.reshape(B, D * K)


def _reference(x, score_w, centers):
    # Pure-JAX reference mirroring the PyTorch module (f32 throughout).
    scores = jnp.einsum('kd,bdn->bkn', score_w, x)
    scores = jax.nn.softmax(scores, axis=1)
    diff = x[:, :, None, :] - centers[None, :, :, None]          # (B, D, K, N)
    desc = jnp.sum(scores[:, None, :, :] * diff, axis=-1)        # (B, D, K)
    desc = desc / jnp.maximum(
        jnp.linalg.norm(desc, axis=1, keepdims=True), 1e-12)     # intranorm over D
    desc = desc.reshape(x.shape[0], -1)
    desc = desc / jnp.maximum(
        jnp.linalg.norm(desc, axis=1, keepdims=True), 1e-12)
    return desc


if __name__ == "__main__":
    # Small shapes consistent with the module (input_dim=D, K clusters, N
    # points), scaled down from the (512, 64) defaults.  N is deliberately not
    # a multiple of 128 so the padded-point masking path is exercised.
    B, D, K, N = 8, 128, 16, 192

    key = jax.random.PRNGKey(0)
    kx, kw, kc = jax.random.split(key, 3)

    x = jax.random.normal(kx, (B, D, N), dtype=jnp.float32)
    # Conv1d(D, K, kernel_size=1, bias=False) weight -> (K, D)
    score_w = jax.random.normal(kw, (K, D), dtype=jnp.float32) * (1.0 / jnp.sqrt(D))
    # centers, xavier_uniform_-style bound
    bound = float(jnp.sqrt(6.0 / (D + K)))
    centers = jax.random.uniform(kc, (D, K), dtype=jnp.float32,
                                 minval=-bound, maxval=bound)
    # TODO(synk): score_bias=True variant (Conv1d bias) not wired in (module
    # default is bias=False).

    ref = _reference(x, score_w, centers)

    # Exact-math path (f32 MXU inputs, exact softmax divide): tight check.
    out_f32 = jax.block_until_ready(
        netvlad_forward(x, score_w, centers, matmul_dtype=jnp.float32))
    assert out_f32.shape == (B, D * K)
    assert jnp.allclose(out_f32, ref, atol=2e-3, rtol=2e-3)

    # Default fast path (bf16 x / weights, f32 accumulation): relaxed tolerance.
    out = jax.block_until_ready(netvlad_forward(x, score_w, centers))
    assert out.shape == (B, D * K)
    assert jnp.allclose(out, ref, atol=2e-2, rtol=2e-2)

    # Same fast path with forced small tiles: exercises the N-reduction loop
    # (accumulator init / finalize) and masking on a partial last N block.
    out_tiled = jax.block_until_ready(
        netvlad_forward(x, score_w, centers, batch_tile=2, n_tile=128))
    assert out_tiled.shape == (B, D * K)
    assert jnp.allclose(out_tiled, ref, atol=2e-2, rtol=2e-2)

    print("KERNEL_OK")
</pallas_src>

<mosaic_0001>
module attributes {stable_mosaic.version = 11 : i64} {
  func.func @_netvlad_kernel(%arg0: i32, %arg1: i32, %arg2: memref<2x128x256xf32, #tpu.memory_space<vmem>>, %arg3: memref<16x128xf32, #tpu.memory_space<vmem>>, %arg4: memref<128x16xf32, #tpu.memory_space<vmem>>, %arg5: memref<2x128x16xf32, #tpu.memory_space<vmem>>, %arg6: memref<2x128x16xf32, #tpu.memory_space<vmem>>, %arg7: memref<2x1x16xf32, #tpu.memory_space<vmem>>) attributes {dimension_semantics = [#tpu.dimension_semantics<parallel>, #tpu.dimension_semantics<arbitrary>], iteration_bounds = array<i64: 4, 1>, scalar_prefetch = 0 : i64, scratch_operands = 2 : i64, tpu.core_type = #tpu.core_type<tc>, window_params = [{transform_indices = @transform_0, window_bounds = array<i64: 2, 128, 256>}, {pipeline_mode = #tpu.pipeline_mode<synchronous>, transform_indices = @transform_1, window_bounds = array<i64: 16, 128>}, {pipeline_mode = #tpu.pipeline_mode<synchronous>, transform_indices = @transform_2, window_bounds = array<i64: 128, 16>}, {transform_indices = @transform_3, window_bounds = array<i64: 2, 128, 16>}]} {
    %c0_i32 = arith.constant 0 : i32
    %0 = arith.cmpi eq, %arg1, %c0_i32 : i32
    %1 = arith.extui %0 : i1 to i32
    %c0_i32_0 = arith.constant 0 : i32
    %2 = arith.cmpi ne, %1, %c0_i32_0 : i32
    scf.if %2 {
      %cst_24 = arith.constant 0.000000e+00 : f32
      %40 = vector.broadcast %cst_24 : f32 to vector<2x128x16xf32>
      %c0_25 = arith.constant 0 : index
      %c0_26 = arith.constant 0 : index
      %c0_27 = arith.constant 0 : index
      %41 = vector.load %arg6[%c0_25, %c0_26, %c0_27] : memref<2x128x16xf32, #tpu.memory_space<vmem>>, vector<2x128x16xf32>
      tpu.vector_store %arg6[%c0_25, %c0_26, %c0_27], %40 {strides = array<i32>} : memref<2x128x16xf32, #tpu.memory_space<vmem>>, vector<2x128x16xf32>,
      %cst_28 = arith.constant 0.000000e+00 : f32
      %42 = vector.broadcast %cst_28 : f32 to vector<2x1x16xf32>
      %c0_29 = arith.constant 0 : index
      %c0_30 = arith.constant 0 : index
      %c0_31 = arith.constant 0 : index
      %43 = vector.load %arg7[%c0_29, %c0_30, %c0_31] : memref<2x1x16xf32, #tpu.memory_space<vmem>>, vector<2x1x16xf32>
      tpu.vector_store %arg7[%c0_29, %c0_30, %c0_31], %42 {strides = array<i32>} : memref<2x1x16xf32, #tpu.memory_space<vmem>>, vector<2x1x16xf32>,
    } else {
    }
    %c0 = arith.constant 0 : index
    %c0_1 = arith.constant 0 : index
    %c0_2 = arith.constant 0 : index
    %3 = vector.load %arg2[%c0, %c0_1, %c0_2] : memref<2x128x256xf32, #tpu.memory_space<vmem>>, vector<2x128x256xf32>
    %c0_3 = arith.constant 0 : index
    %c0_4 = arith.constant 0 : index
    %4 = vector.load %arg3[%c0_3, %c0_4] : memref<16x128xf32, #tpu.memory_space<vmem>>, vector<16x128xf32>
    %5 = vector.shape_cast %4 : vector<16x128xf32> to vector<1x16x128xf32>
    %6 = vector.shape_cast %5 : vector<1x16x128xf32> to vector<1x16x128xf32>
    %7 = vector.broadcast %6 : vector<1x16x128xf32> to vector<2x16x128xf32>
    %cst = arith.constant dense<0.000000e+00> : vector<2x16x256xf32>
    %8 = tpu.matmul %7, %3, %cst {dimension_numbers = #tpu.dot_dimension_numbers<[2], [1], [1], [2], [0, 0, 0, 1, 1, 2], [0], [0]>} : vector<2x16x128xf32>, vector<2x128x256xf32>, vector<2x16x256xf32> -> vector<2x16x256xf32>
    %cst_5 = arith.constant dense<0xFF800000> : vector<2x256xf32>
    %9 = vector.multi_reduction <maximumf>, %8, %cst_5 [1] : vector<2x16x256xf32> to vector<2x256xf32>
    %10 = vector.shape_cast %9 : vector<2x256xf32> to vector<2x1x256xf32>
    %11 = vector.broadcast %10 : vector<2x1x256xf32> to vector<2x16x256xf32>
    %12 = arith.subf %8, %11 : vector<2x16x256xf32>
    %13 = math.exp %12 : vector<2x16x256xf32>
    %cst_6 = arith.constant dense<0.000000e+00> : vector<2x256xf32>
    %14 = vector.multi_reduction <add>, %13, %cst_6 [1] : vector<2x16x256xf32> to vector<2x256xf32>
    %15 = vector.shape_cast %14 : vector<2x256xf32> to vector<2x1x256xf32>
    %16 = vector.broadcast %15 : vector<2x1x256xf32> to vector<2x16x256xf32>
    %17 = arith.divf %13, %16 : vector<2x16x256xf32>
    %c256_i32 = arith.constant 256 : i32
    %18 = arith.muli %arg1, %c256_i32 : i32
    %19 = tpu.iota {dimensions = array<i32: 2>} : vector<1x1x256xi32>
    %20 = vector.broadcast %18 : i32 to vector<1x1x256xi32>
    %21 = arith.addi %20, %19 : vector<1x1x256xi32>
    %c192_i32 = arith.constant 192 : i32
    %22 = vector.broadcast %c192_i32 : i32 to vector<1x1x256xi32>
    %23 = arith.cmpi slt, %21, %22 : vector<1x1x256xi32>
    %cst_7 = arith.constant 0.000000e+00 : f32
    %24 = vector.shape_cast %23 : vector<1x1x256xi1> to vector<1x1x256xi1>
    %25 = vector.broadcast %24 : vector<1x1x256xi1> to vector<2x16x256xi1>
    %26 = vector.broadcast %cst_7 : f32 to vector<2x16x256xf32>
    %27 = arith.select %25, %17, %26 : vector<2x16x256xi1>, vector<2x16x256xf32>
    %c0_8 = arith.constant 0 : index
    %c0_9 = arith.constant 0 : index
    %c0_10 = arith.constant 0 : index
    %28 = vector.load %arg7[%c0_8, %c0_9, %c0_10] : memref<2x1x16xf32, #tpu.memory_space<vmem>>, vector<2x1x16xf32>
    %cst_11 = arith.constant dense<0.000000e+00> : vector<2x16xf32>
    %29 = vector.multi_reduction <add>, %27, %cst_11 [2] : vector<2x16x256xf32> to vector<2x16xf32>
    %30 = vector.shape_cast %29 : vector<2x16xf32> to vector<2x1x16xf32>
    %31 = arith.addf %28, %30 : vector<2x1x16xf32>
    %c0_12 = arith.constant 0 : index
    %c0_13 = arith.constant 0 : index
    %c0_14 = arith.constant 0 : index
    %32 = vector.load %arg7[%c0_12, %c0_13, %c0_14] : memref<2x1x16xf32, #tpu.memory_space<vmem>>, vector<2x1x16xf32>
    tpu.vector_store %arg7[%c0_12, %c0_13, %c0_14], %31 {strides = array<i32>} : memref<2x1x16xf32, #tpu.memory_space<vmem>>, vector<2x1x16xf32>,
    %c0_15 = arith.constant 0 : index
    %c0_16 = arith.constant 0 : index
    %c0_17 = arith.constant 0 : index
    %33 = vector.load %arg6[%c0_15, %c0_16, %c0_17] : memref<2x128x16xf32, #tpu.memory_space<vmem>>, vector<2x128x16xf32>
    %cst_18 = arith.constant dense<0.000000e+00> : vector<2x128x16xf32>
    %34 = tpu.matmul %3, %27, %cst_18 {dimension_numbers = #tpu.dot_dimension_numbers<[2], [2], [1], [1], [0, 0, 0, 1, 1, 1], [0], [0]>} : vector<2x128x256xf32>, vector<2x16x256xf32>, vector<2x128x16xf32> -> vector<2x128x16xf32>
    %35 = arith.addf %33, %34 : vector<2x128x16xf32>
    %c0_19 = arith.constant 0 : index
    %c0_20 = arith.constant 0 : index
    %c0_21 = arith.constant 0 : index
    %36 = vector.load %arg6[%c0_19, %c0_20, %c0_21] : memref<2x128x16xf32, #tpu.memory_space<vmem>>, vector<2x128x16xf32>
    tpu.vector_store %arg6[%c0_19, %c0_20, %c0_21], %35 {strides = array<i32>} : memref<2x128x16xf32, #tpu.memory_space<vmem>>, vector<2x128x16xf32>,
    %c0_i32_22 = arith.constant 0 : i32
    %37 = arith.cmpi eq, %arg1, %c0_i32_22 : i32
    %38 = arith.extui %37 : i1 to i32
    %c0_i32_23 = arith.constant 0 : i32
    %39 = arith.cmpi ne, %38, %c0_i32_23 : i32
    scf.if %39 {
      %c0_24 = arith.constant 0 : index
      %c0_25 = arith.constant 0 : index
      %40 = vector.load %arg4[%c0_24, %c0_25] : memref<128x16xf32, #tpu.memory_space<vmem>>, vector<128x16xf32>
      %c0_26 = arith.constant 0 : index
      %c0_27 = arith.constant 0 : index
      %c0_28 = arith.constant 0 : index
      %41 = vector.load %arg6[%c0_26, %c0_27, %c0_28] : memref<2x128x16xf32, #tpu.memory_space<vmem>>, vector<2x128x16xf32>
      %42 = vector.shape_cast %40 : vector<128x16xf32> to vector<1x128x16xf32>
      %c0_29 = arith.constant 0 : index
      %c0_30 = arith.constant 0 : index
      %c0_31 = arith.constant 0 : index
      %43 = vector.load %arg7[%c0_29, %c0_30, %c0_31] : memref<2x1x16xf32, #tpu.memory_space<vmem>>, vector<2x1x16xf32>
      %44 = vector.broadcast %42 : vector<1x128x16xf32> to vector<2x128x16xf32>
      %45 = vector.broadcast %43 : vector<2x1x16xf32> to vector<2x128x16xf32>
      %46 = arith.mulf %44, %45 : vector<2x128x16xf32>
      %47 = arith.subf %41, %46 : vector<2x128x16xf32>
      %48 = arith.mulf %47, %47 : vector<2x128x16xf32>
      %cst_32 = arith.constant dense<0.000000e+00> : vector<2x16xf32>
      %49 = vector.multi_reduction <add>, %48, %cst_32 [1] : vector<2x128x16xf32> to vector<2x16xf32>
      %50 = vector.shape_cast %49 : vector<2x16xf32> to vector<2x1x16xf32>
      %cst_33 = arith.constant 1.000000e-24 : f32
      %51 = vector.broadcast %cst_33 : f32 to vector<2x1x16xf32>
      %52 = arith.maximumf %50, %51 : vector<2x1x16xf32>
      %53 = math.rsqrt %52 : vector<2x1x16xf32>
      %54 = vector.broadcast %53 : vector<2x1x16xf32> to vector<2x128x16xf32>
      %55 = arith.mulf %47, %54 : vector<2x128x16xf32>
      %56 = arith.mulf %55, %55 : vector<2x128x16xf32>
      %cst_34 = arith.constant dense<0.000000e+00> : vector<2x128xf32>
      %57 = vector.multi_reduction <add>, %56, %cst_34 [2] : vector<2x128x16xf32> to vector<2x128xf32>
      %58 = vector.shape_cast %57 : vector<2x128xf32> to vector<2x128x1xf32>
      %cst_35 = arith.constant dense<0.000000e+00> : vector<2x1xf32>
      %59 = vector.multi_reduction <add>, %58, %cst_35 [1] : vector<2x128x1xf32> to vector<2x1xf32>
      %60 = vector.shape_cast %59 : vector<2x1xf32> to vector<2x1x1xf32>
      %cst_36 = arith.constant 1.000000e-24 : f32
      %61 = vector.broadcast %cst_36 : f32 to vector<2x1x1xf32>
      %62 = arith.maximumf %60, %61 : vector<2x1x1xf32>
      %63 = math.rsqrt %62 : vector<2x1x1xf32>
      %64 = vector.broadcast %63 : vector<2x1x1xf32> to vector<2x128x16xf32>
      %65 = arith.mulf %55, %64 : vector<2x128x16xf32>
      %c0_37 = arith.constant 0 : index
      %c0_38 = arith.constant 0 : index
      %c0_39 = arith.constant 0 : index
      %66 = vector.load %arg5[%c0_37, %c0_38, %c0_39] : memref<2x128x16xf32, #tpu.memory_space<vmem>>, vector<2x128x16xf32>
      tpu.vector_store %arg5[%c0_37, %c0_38, %c0_39], %65 {strides = array<i32>} : memref<2x128x16xf32, #tpu.memory_space<vmem>>, vector<2x128x16xf32>,
    } else {
    }
    return
  }
  func.func @transform_0(%arg0: i32, %arg1: i32) -> (i32, i32, i32) {
    %c0_i32 = arith.constant 0 : i32
    %c0_i32_0 = arith.constant 0 : i32
    return %arg0, %c0_i32, %arg1 : i32, i32, i32
  }
  func.func @transform_1(%arg0: i32, %arg1: i32) -> (i32, i32) {
    %c0_i32 = arith.constant 0 : i32
    %c0_i32_0 = arith.constant 0 : i32
    %c0_i32_1 = arith.constant 0 : i32
    return %c0_i32, %c0_i32_0 : i32, i32
  }
  func.func @transform_2(%arg0: i32, %arg1: i32) -> (i32, i32) {
    %c0_i32 = arith.constant 0 : i32
    %c0_i32_0 = arith.constant 0 : i32
    %c0_i32_1 = arith.constant 0 : i32
    return %c0_i32, %c0_i32_0 : i32, i32
  }
  func.func @transform_3(%arg0: i32, %arg1: i32) -> (i32, i32, i32) {
    %c0_i32 = arith.constant 0 : i32
    %c0_i32_0 = arith.constant 0 : i32
    %c0_i32_1 = arith.constant 0 : i32
    return %arg0, %c0_i32, %c0_i32_0 : i32, i32, i32
  }
}

</mosaic_0001>

<bundles_post_ra>
// kernel: tpu_custom_call.1
= control target key start
LH: loop header
LB: loop body
LE: loop exit
PB: predicated region body
PF: predicated region fallthrough
CT: control target
= control target key end

     0   :  { %8 = vsyncpa [#allocation5], 0  ;;  %s3571_s0 = inlined_call_operand.hbm [shape: f32[8,128,256], index: 0, kind: input, shape index: {}]   ;;  %s3572_s1 = inlined_call_operand.vmem [shape: f32[16,128], index: 1, kind: input, shape index: {}]   ;;  %s3573_s2 = inlined_call_operand.vmem [shape: f32[128,16], index: 2, kind: input, shape index: {}]   ;;  %s3574_s3 = inlined_call_operand.vmem [shape: f32[8,128,16], index: 3, kind: output, shape index: {}]  }
   0x1   :  { %10 = vsyncpa [#allocation5 + $0x1], 0  ;;  %s2272_s12 = smov 0   ;;  %s2274_s13 = smov 0  }
   0x2   :  { %s2276_s14 = smov 0   ;;  %s2278_s15 = smov 0  }
   0x3   :  { %s2280_s16 = smov 0   ;;  %s2282_s17 = smov 0  }
   0x4 LB: > { %s1972_s18 = sadd.s32 4294967295, %s2244_s17   ;;  %s28_s19 = sadd.s32 1, %s2240_s16  ;;  %s2244_s17 = sphi %s2282_s17, %s16_s17   ;;  %s2240_s16 = sphi %s2280_s16, %s3688_s16   ;;  %s2236_s15 = sphi %s2278_s15, %s3687_s15   ;;  %s2232_s14 = sphi %s2276_s14, %s3686_s14   ;;  %s2228_s13 = sphi %s2274_s13, %s3685_s13   ;;  %s2224_s12 = sphi %s2272_s12, %s3684_s12  }
   0x5   : > { %p30_p0 = scmp.ge.s32.totalorder %s28_s19, 4  ;;  %s37_s20 = sadd.s32 1, %s2232_s14 }
   0x6   : > { %p44_p1 = scmp.ne.s32.totalorder %s2232_s14, %s2228_s13  ;;  %p45_p2 = scmp.eq.s32.totalorder %s2244_s17, 0 }
   0x7   : > { %s3690_s19 = smov (%p30_p0, %s28_s19), 0  ;;  %p50_p4 = scmp.ne.s32.totalorder %s2228_s13, %s2224_s12 }
   0x8   : > { %p2308_p3 = por %p45_p2, %p44_p1  ;;  %s32_s22 = ssub.s32 %s2240_s16, %s3690_s19 }
   0x9   : > { %p51_p5 = scmp.eq.s32.totalorder %s1972_s18, 0  ;;  %p35_p6 = scmp.eq.s32.totalorder %s32_s22, 0 }
   0xa   : > { %p2076_p8 = scmp.lt.s32.totalorder %s2244_s17, 4  ;;  %s148_s25 = sand.u32 1, %s2232_s14  }
   0xb   : > { %p2315_p7 = por %p51_p5, %p50_p4  ;;  %s1994_s26 = sshll.u32 %s2240_s16, 13 }
   0xc   : > { %s2321_s24 = scalar_select %p35_p6, %s2232_s14, %s37_s20  }
   0xd   : > { %s1976_s27 = sshll.u32 %s148_s25, 9  ;;  %s2328_s30 = scalar_lea.hbm %s3571_s0, %s1994_s26 }
   0xe   : > { %s152_s4 = scalar_lea.vmem [#allocation4], %s1976_s27  ;;  %p2332_p9 = pnand %p2076_p8, %p2308_p3 }
   0xf   : > { %s162_s5 = sshll.u32 %s152_s4, 4  ;;  %s2338_s7 = scalar_lea.sflag [#allocation5], %s148_s25  ;;  %s2336_s5 = int_to_ptr.vmem [resolvable:$true] %s162_s5 }
  0x10   : > { %s2164_s8 = scalar_lea.hbm %s2328_s30, 8192  ;;  %p2166_p11 = pneg %p2332_p9 }
  0x11   : > { %p2165_p10 = scmp.ne.s32.totalorder %s2328_s30, %s2164_s8  ;;  %s2169_s11 = scalar_lea.hbm %s3571_s0, 32768 }
  0x12   : > { %p2170_p0 = scmp.lt.u32.totalorder %s2328_s30, %s3571_s0  ;;  %p2171_p1 = scmp.lt.u32.totalorder %s2169_s11, %s2164_s8 }
  0x13   : > { %p2167_p12 = pnand %p2166_p11, %p2165_p10  ;;  %p2173_p3 = scmp.lt.u32.totalorder %s2164_s8, %s2328_s30 }
  0x14   : > { %p2172_p2 = por %p2171_p1, %p2170_p0 }
  0x15   : > { %p2168_p13 = pneg %p2167_p12 }
  0x16   : > { %p2174_p4 = por %p2173_p3, %p2172_p2 }
  0x18   : > { %p2175_p5 = pnand %p2174_p4, %p2168_p13 }
  0x1a   : > { %2178 = shalt.err (!%p2175_p5)
}
  0x1b   : > { %s2179_s20 = scalar_lea.vmem %s2336_s5, 8192  ;;  %s2246_s21 = smov [#allocation4]  }
  0x1c   : > { %p2180_p6 = scmp.ne.s32.totalorder %s2336_s5, %s2179_s20  ;;  %s2184_s22 = sshll.u32 %s2246_s21, 4  ;;  %s2185_s22 = int_to_ptr.vmem [resolvable:$false] %s2184_s22 }
  0x1d   : > { %s2186_s25 = scalar_lea.vmem %s2185_s22, 16384  ;;  %p2187_p12 = scmp.lt.s32.totalorder %s2336_s5, %s2185_s22 }
  0x1e   : > { %p2182_p8 = pnand %p2180_p6, %p2166_p11  ;;  %p2188_p0 = scmp.lt.s32.totalorder %s2186_s25, %s2179_s20 }
  0x20   : > { %p2183_p10 = pneg %p2182_p8  ;;  %p2189_p1 = por %p2188_p0, %p2187_p12 }
  0x22   : > { %p2190_p2 = pnand %p2189_p1, %p2183_p10 }
  0x24   : > { %2193 = shalt.err (!%p2190_p2)
}
  0x25   : > { %s2247_s26 = smov 256   ;;  %s2248_s27 = smov 16  }
  0x26   : > { %2075 = dma.hbm_to_vmem [thread:$0]  (!%p2332_p9), %s2328_s30, 8192, %s2336_s5, %s2338_s7, %s2247_s26, %s2247_s26, %s2248_s27  }
  0x27   : > { %p1980_p11 = scmp.ge.s32.totalorder %s2244_s17, 1  ;;  %p170_p13 = scmp.lt.s32.totalorder %s2244_s17, 5 }
  0x29   : > { %p171_p3 = pnand %p1980_p11, %p170_p13 }
  0x2b   : > { %174 = sbr.rel (%p171_p3) target bundleno = 1006 (0x3ee), region = 32 }
  0x32   : > { %s176_s28 = sand.u32 1, %s2228_s13  }
  0x33   : > { %s1981_s29 = sshll.u32 %s176_s28, 9  ;;  %s177_s4 = scalar_lea.sflag [#allocation5], %s176_s28 }
  0x34   : > { %s2369_s8 = scalar_lea.vmem [#allocation4], %s1981_s29 }
  0x35   : > { %2219 = dma.done.wait (%p2315_p7), %s177_s4, 8192  }
  0x36   : > { %2221 = vsyncadd (%p2315_p7), %s177_s4, 4294959104  ;;  %v3575_v0 = vmov 0.0   ;;  %v2378_v1 = vld [vmem:[%s2369_s8 + $0x8] sm:$0xff]  ;;  %v2381_v2 = vld [vmem:[%s2369_s8 + $0x18] sm:$0xff]  ;;  %vm217_vm2 = vcmask 130048   ;;  %vm250_vm3 = vcmask 122880  }
  0x37   : > { %383 = vmatprep.mubr.f32.mxu0 %v3575_v0  ;;  %460 = vmatprep.mubr.f32.mxu1 %v3575_v0  ;;  %v2384_v3 = vld [vmem:[%s2369_s8 + $0x108] sm:$0xff]  ;;  %v1996_v4 = vpack.c.bf16 %v2381_v2, %v2378_v1  ;;  %v2389_v5 = vld [vmem:[%s2369_s8 + $0x118] sm:$0xff]  ;;  %v2392_v6 = vld [vmem:[%s2369_s8] sm:$0xff]  ;;  %vm949_vm4 = vcmask 130112   ;;  %s1982_s28 = sshll.u32 %s2236_s15, 1 }
  0x38   : > { %v2395_v7 = vld [vmem:[%s2369_s8 + $0x10] sm:$0xff]  ;;  %v2028_v8 = vpack.c.bf16 %v2389_v5, %v2384_v3  ;;  %v2402_v10 = vld [vmem:[%s2369_s8 + $0x100] sm:$0xff]  ;;  %v2408_v12 = vld [vmem:[%s2369_s8 + $0x28] sm:$0xff]  ;;  %p207_p7 = scmp.lt.s32.totalorder %s1982_s28, 7 }
  0x39   : > { %v1998_v9 = vpack.c.bf16 %v2395_v7, %v2392_v6  ;;  %v2405_v11 = vld [vmem:[%s2369_s8 + $0x110] sm:$0xff]  ;;  %1997 = vmatprep.subr.bf16.mxu0 %v1996_v4  ;;  %v2413_v14 = vld [vmem:[%s2369_s8 + $0x38] sm:$0xff]  ;;  %v2416_v15 = vld [vmem:[%s2369_s8 + $0x128] sm:$0xff] }
  0x3a   : > { %v2030_v13 = vpack.c.bf16 %v2405_v11, %v2402_v10  ;;  %v2419_v16 = vld [vmem:[%s2369_s8 + $0x138] sm:$0xff]  ;;  %2029 = vmatprep.subr.bf16.mxu1 %v2028_v8  ;;  %v2000_v17 = vpack.c.bf16 %v2413_v14, %v2408_v12  ;;  %v2426_v19 = vld [vmem:[%s2369_s8 + $0x20] sm:$0xff]  ;;  %v2429_v20 = vld [vmem:[%s2369_s8 + $0x30] sm:$0xff]  ;;  %s3692_s28 = smov (!%p207_p7, %s1982_s28), 7 }
  0x3b   : > { %1999 = vmatpush1.bf16.msra.mxu0 %v1998_v9  ;;  %v2032_v18 = vpack.c.bf16 %v2419_v16, %v2416_v15  ;;  %v2432_v21 = vld [vmem:[%s2369_s8 + $0x120] sm:$0xff]  ;;  %v2002_v22 = vpack.c.bf16 %v2429_v20, %v2426_v19  ;;  %v2437_v23 = vld [vmem:[%s2369_s8 + $0x130] sm:$0xff]  ;;  %v2440_v24 = vld [vmem:[%s2369_s8 + $0x48] sm:$0xff]  ;;  %s1995_s29 = sshll.u32 %s3692_s28, 7 }
  0x3c   : > { %2031 = vmatpush1.bf16.msra.mxu1 %v2030_v13  ;;  %v2443_v25 = vld [vmem:[%s2369_s8 + $0x58] sm:$0xff]  ;;  %2001 = vmatprep.subr.bf16.mxu0 %v2000_v17  ;;  %v2034_v26 = vpack.c.bf16 %v2437_v23, %v2432_v21  ;;  %v2450_v28 = vld [vmem:[%s2369_s8 + $0x148] sm:$0xff]  ;;  %v2456_v30 = vld [vmem:[%s2369_s8 + $0x40] sm:$0xff]  ;;  %s3455_s15 = scalar_lea.vmem %s3574_s3, %s1995_s29 }
  0x3d   : > { %2033 = vmatprep.subr.bf16.mxu1 %v2032_v18  ;;  %v2004_v27 = vpack.c.bf16 %v2443_v25, %v2440_v24  ;;  %v2453_v29 = vld [vmem:[%s2369_s8 + $0x158] sm:$0xff]  ;;  %v2461_v32 = vld [vmem:[%s2369_s8 + $0x50] sm:$0xff]  ;;  %v2464_v33 = vld [vmem:[%s2369_s8 + $0x140] sm:$0xff] }
  0x3e   : > { %v2036_v31 = vpack.c.bf16 %v2453_v29, %v2450_v28  ;;  %v2467_v34 = vld [vmem:[%s2369_s8 + $0x150] sm:$0xff]  ;;  %v2006_v35 = vpack.c.bf16 %v2461_v32, %v2456_v30  ;;  %v2472_v36 = vld [vmem:[%s2369_s8 + $0x68] sm:$0xff]  ;;  %v2475_v37 = vld [vmem:[%s2369_s8 + $0x78] sm:$0xff] }
  0x3f   : > { %2003 = vmatpush1.bf16.msra.mxu0 %v2002_v22  ;;  %v2478_v38 = vld [vmem:[%s2369_s8 + $0x168] sm:$0xff]  ;;  %v2038_v39 = vpack.c.bf16 %v2467_v34, %v2464_v33  ;;  %v2008_v40 = vpack.c.bf16 %v2475_v37, %v2472_v36  ;;  %v2485_v41 = vld [vmem:[%s2369_s8 + $0x178] sm:$0xff]  ;;  %v2488_v42 = vld [vmem:[%s2369_s8 + $0x60] sm:$0xff] }
  0x40   : > { %2035 = vmatpush1.bf16.msra.mxu1 %v2034_v26  ;;  %2005 = vmatprep.subr.bf16.mxu0 %v2004_v27  ;;  %v2491_v43 = vld [vmem:[%s2369_s8 + $0x70] sm:$0xff]  ;;  %v2040_v44 = vpack.c.bf16 %v2485_v41, %v2478_v38  ;;  %v2496_v45 = vld [vmem:[%s2369_s8 + $0x160] sm:$0xff]  ;;  %v2502_v47 = vld [vmem:[%s2369_s8 + $0x88] sm:$0xff] }
  0x41   : > { %2037 = vmatprep.subr.bf16.mxu1 %v2036_v31  ;;  %v2499_v46 = vld [vmem:[%s2369_s8 + $0x170] sm:$0xff]  ;;  %3615 = vst [vmem:[#allocation8_spill] sm:$0xff] %v2502_v47  ;;  %v2505_v48 = vld [vmem:[%s2369_s8 + $0x98] sm:$0xff]  ;;  %v2508_v49 = vld [vmem:[%s2369_s8 + $0x188] sm:$0xff]  ;;  %v2010_v51 = vpack.c.bf16 %v2491_v43, %v2488_v42 }
  0x42   : > { %3614 = vst [vmem:[#allocation7_spill] sm:$0xff] %v2499_v46  ;;  %3616 = vst [vmem:[#allocation9_spill] sm:$0xff] %v2505_v48  ;;  %v2511_v50 = vld [vmem:[%s2369_s8 + $0x198] sm:$0xff]  ;;  %v2042_v52 = vpack.c.bf16 %v2499_v46, %v2496_v45  ;;  %v2012_v53 = vpack.c.bf16 %v2505_v48, %v2502_v47  ;;  %v2520_v54 = vld [vmem:[%s2369_s8 + $0x80] sm:$0xff] }
  0x43   : > { %3617 = vst [vmem:[#allocation10_spill] sm:$0xff] %v2508_v49  ;;  %3618 = vst [vmem:[#allocation11_spill] sm:$0xff] %v2511_v50  ;;  %2007 = vmatpush1.bf16.msra.mxu0 %v2006_v35  ;;  %v2523_v55 = vld [vmem:[%s2369_s8 + $0x90] sm:$0xff]  ;;  %v2526_v56 = vld [vmem:[%s2369_s8 + $0x180] sm:$0xff]  ;;  %v2044_v57 = vpack.c.bf16 %v2511_v50, %v2508_v49 }
  0x44   : > { %2039 = vmatpush1.bf16.msra.mxu1 %v2038_v39  ;;  %2009 = vmatprep.subr.bf16.mxu0 %v2008_v40  ;;  %3619 = vst [vmem:[#allocation12_spill] sm:$0xff] %v2520_v54  ;;  %3620 = vst [vmem:[#allocation13_spill] sm:$0xff] %v2523_v55  ;;  %v2531_v58 = vld [vmem:[%s2369_s8 + $0x190] sm:$0xff]  ;;  %v2534_v59 = vld [vmem:[%s2369_s8 + $0xa8] sm:$0xff]  ;;  %v2014_v63 = vpack.c.bf16 %v2523_v55, %v2520_v54 }
  0x45   : > { %3621 = vst [vmem:[#allocation14_spill] sm:$0xff] %v2526_v56  ;;  %2041 = vmatprep.subr.bf16.mxu1 %v2040_v44  ;;  %3622 = vst [vmem:[#allocation15_spill] sm:$0xff] %v2531_v58  ;;  %v2537_v60 = vld [vmem:[%s2369_s8 + $0xb8] sm:$0xff]  ;;  %v2540_v61 = vld [vmem:[%s2369_s8 + $0x1a8] sm:$0xff]  ;;  %v2046_v4 = vpack.c.bf16 %v2531_v58, %v2526_v56 }
  0x46   : > { %3623 = vst [vmem:[#allocation16_spill] sm:$0xff] %v2534_v59  ;;  %3624 = vst [vmem:[#allocation17_spill] sm:$0xff] %v2537_v60  ;;  %v2543_v62 = vld [vmem:[%s2369_s8 + $0x1b8] sm:$0xff]  ;;  %v2016_v8 = vpack.c.bf16 %v2537_v60, %v2534_v59  ;;  %v2552_v9 = vld [vmem:[%s2369_s8 + $0xa0] sm:$0xff] }
  0x47   : > { %3625 = vst [vmem:[#allocation18_spill] sm:$0xff] %v2540_v61  ;;  %3626 = vst [vmem:[#allocation19_spill] sm:$0xff] %v2543_v62  ;;  %2011 = vmatpush1.bf16.msra.mxu0 %v2010_v51  ;;  %v2555_v13 = vld [vmem:[%s2369_s8 + $0xb0] sm:$0xff]  ;;  %v2558_v17 = vld [vmem:[%s2369_s8 + $0x1a0] sm:$0xff]  ;;  %v2048_v18 = vpack.c.bf16 %v2543_v62, %v2540_v61 }
  0x48   : > { %2043 = vmatpush1.bf16.msra.mxu1 %v2042_v52  ;;  %2013 = vmatprep.subr.bf16.mxu0 %v2012_v53  ;;  %3627 = vst [vmem:[#allocation20_spill] sm:$0xff] %v2552_v9  ;;  %3628 = vst [vmem:[#allocation21_spill] sm:$0xff] %v2555_v13  ;;  %v2563_v22 = vld [vmem:[%s2369_s8 + $0x1b0] sm:$0xff]  ;;  %v2566_v26 = vld [vmem:[%s2369_s8 + $0xc8] sm:$0xff]  ;;  %v2018_v39 = vpack.c.bf16 %v2555_v13, %v2552_v9 }
  0x49   : > { %3629 = vst [vmem:[#allocation22_spill] sm:$0xff] %v2558_v17  ;;  %2045 = vmatprep.subr.bf16.mxu1 %v2044_v57  ;;  %3630 = vst [vmem:[#allocation23_spill] sm:$0xff] %v2563_v22  ;;  %v2569_v27 = vld [vmem:[%s2369_s8 + $0xd8] sm:$0xff]  ;;  %v2572_v31 = vld [vmem:[%s2369_s8 + $0x1c8] sm:$0xff]  ;;  %v2050_v40 = vpack.c.bf16 %v2563_v22, %v2558_v17 }
  0x4a   : > { %3631 = vst [vmem:[#allocation24_spill] sm:$0xff] %v2566_v26  ;;  %3632 = vst [vmem:[#allocation25_spill] sm:$0xff] %v2569_v27  ;;  %v2575_v35 = vld [vmem:[%s2369_s8 + $0x1d8] sm:$0xff]  ;;  %v2020_v44 = vpack.c.bf16 %v2569_v27, %v2566_v26  ;;  %v2584_v51 = vld [vmem:[%s2369_s8 + $0xc0] sm:$0xff] }
  0x4b   : > { %3633 = vst [vmem:[#allocation26_spill] sm:$0xff] %v2572_v31  ;;  %3634 = vst [vmem:[#allocation27_spill] sm:$0xff] %v2575_v35  ;;  %2015 = vmatpush1.bf16.msra.mxu0 %v2014_v63  ;;  %v2587_v52 = vld [vmem:[%s2369_s8 + $0xd0] sm:$0xff]  ;;  %v2590_v53 = vld [vmem:[%s2369_s8 + $0x1c0] sm:$0xff]  ;;  %v2052_v57 = vpack.c.bf16 %v2575_v35, %v2572_v31 }
  0x4c   : > { %2047 = vmatpush1.bf16.msra.mxu1 %v2046_v4  ;;  %2017 = vmatprep.subr.bf16.mxu0 %v2016_v8  ;;  %3635 = vst [vmem:[#allocation28_spill] sm:$0xff] %v2584_v51  ;;  %3636 = vst [vmem:[#allocation29_spill] sm:$0xff] %v2587_v52  ;;  %v2595_v63 = vld [vmem:[%s2369_s8 + $0x1d0] sm:$0xff]  ;;  %v2598_v4 = vld [vmem:[%s2369_s8 + $0xe8] sm:$0xff]  ;;  %v2022_v22 = vpack.c.bf16 %v2587_v52, %v2584_v51 }
  0x4d   : > { %3637 = vst [vmem:[#allocation30_spill] sm:$0xff] %v2590_v53  ;;  %2049 = vmatprep.subr.bf16.mxu1 %v2048_v18  ;;  %3638 = vst [vmem:[#allocation31_spill] sm:$0xff] %v2595_v63  ;;  %v2601_v8 = vld [vmem:[%s2369_s8 + $0xf8] sm:$0xff]  ;;  %v2604_v0 = vld [vmem:[%s2369_s8 + $0x1e8] sm:$0xff]  ;;  %v2054_v18 = vpack.c.bf16 %v2595_v63, %v2590_v53 }
  0x4e   : > { %3639 = vst [vmem:[#allocation32_spill] sm:$0xff] %v2598_v4  ;;  %3640 = vst [vmem:[#allocation33_spill] sm:$0xff] %v2601_v8  ;;  %v2607_v27 = vld [vmem:[%s2369_s8 + $0x1f8] sm:$0xff]  ;;  %v2024_v35 = vpack.c.bf16 %v2601_v8, %v2598_v4  ;;  %v2616_v31 = vld [vmem:[%s2369_s8 + $0xe0] sm:$0xff] }
  0x4f   : > { %3641 = vst [vmem:[#allocation34_spill] sm:$0xff] %v2604_v0  ;;  %3642 = vst [vmem:[#allocation35_spill] sm:$0xff] %v2607_v27  ;;  %2019 = vmatpush1.bf16.msra.mxu0 %v2018_v39  ;;  %v2619_v26 = vld [vmem:[%s2369_s8 + $0xf0] sm:$0xff]  ;;  %v2056_v13 = vpack.c.bf16 %v2607_v27, %v2604_v0  ;;  %v2624_v39 = vld [vmem:[%s2369_s8 + $0x1e0] sm:$0xff]  ;;  %v3647_v27 = vmov 0.0  }
  0x50   : > { %2051 = vmatpush1.bf16.msra.mxu1 %v2050_v40  ;;  %2021 = vmatprep.subr.bf16.mxu0 %v2020_v44  ;;  %3643 = vst [vmem:[#allocation36_spill] sm:$0xff] %v2616_v31  ;;  %3644 = vst [vmem:[#allocation37_spill] sm:$0xff] %v2619_v26  ;;  %v2627_v62 = vld [vmem:[%s2369_s8 + $0x1f0] sm:$0xff]  ;;  %v2026_v40 = vpack.c.bf16 %v2619_v26, %v2616_v31 }
  0x51   : > { %2053 = vmatprep.subr.bf16.mxu1 %v2052_v57  ;;  %3645 = vst [vmem:[#allocation38_spill] sm:$0xff] %v2624_v39  ;;  %3646 = vst [vmem:[#allocation39_spill] sm:$0xff] %v2627_v62  ;;  %v2058_v44 = vpack.c.bf16 %v2627_v62, %v2624_v39  ;;  %v317_v57 = vld [vmem:[%s3572_s1] sm:$0xff] }
  0x53   : > { %2023 = vmatpush1.bf16.msra.mxu0 %v2022_v22  ;;  %v318_v22 = vld [vmem:[%s3572_s1 + $0x8] sm:$0xff] }
  0x54   : > { %2055 = vmatpush1.bf16.msra.mxu1 %v2054_v18  ;;  %2025 = vmatprep.subr.bf16.mxu0 %v2024_v35 }
  0x55   : > { %2057 = vmatprep.subr.bf16.mxu1 %v2056_v13 }
  0x57   : > { %2027 = vmatpush1.bf16.msra.mxu0 %v2026_v40 }
  0x58   : > { %2059 = vmatpush1.bf16.msra.mxu1 %v2058_v44 }
  0x5a   : > { %384 = vmatmul.mubr.f32.vlgmr.msra.gmra.mrb[0].mxu0 %v317_v57 }
  0x5b   : > { %461 = vmatmul.mubr.f32.vlgmr.msra.gmra.mrb[0].mxu1 %v317_v57  ;;  %389 = vmatprep.mubr.f32.mxu0 %v3647_v27 }
  0x5c   : > { %466 = vmatprep.mubr.f32.mxu1 %v3647_v27 }
  0x5e   : > { %390 = vmatmul.mubr.f32.gmra.mrb[2].mxu0 %v318_v22 }
  0x5f   : > { %467 = vmatmul.mubr.f32.gmra.mrb[2].mxu1 %v318_v22  ;;  %1091 = vmatprep.mubr.f32.mxu0 %v2378_v1 }
  0x60   : > { %1236 = vmatprep.mubr.f32.mxu1 %v2384_v3 }
 0x12d   : > { %v385_v13 = vpop.f32.mrb[0].mxu0 }
 0x12e   : > { %v387_v35 = vpop.f32.mrb[1].mxu0  ;;  %v462_v18 = vpop.f32.mrb[0].mxu1 }
 0x12f   : > { %v464_v40 = vpop.f32.mrb[1].mxu1 }
 0x131   : > { %v391_v44 = vpop.f32.mrb[2].mxu0 }
 0x132   : > { %v473_v57 = vmax.f32 %v385_v13, %v391_v44  ;;  %v468_v62 = vpop.f32.mrb[2].mxu1  ;;  %v393_v26 = vpop.f32.mrb[3].mxu0 }
 0x133   : > { %v487_v39 = vmax.f32 %v462_v18, %v468_v62  ;;  %v480_v8 = vmax.f32 %v387_v35, %v393_v26  ;;  %v470_v31 = vpop.f32.mrb[3].mxu1 }
 0x134   : > { %v474_v0 = vrot.slane %v473_v57, 4  ;;  %v494_v63 = vmax.f32 %v464_v40, %v470_v31 }
 0x135   : > { %v488_v4 = vrot.slane %v487_v39, 4  ;;  %v481_v52 = vrot.slane %v480_v8, 4 }
 0x136   : > { %v475_v22 = vmax.f32 %v473_v57, %v474_v0  ;;  %v495_v53 = vrot.slane %v494_v63, 4 }
 0x137   : > { %v489_v1 = vmax.f32 %v487_v39, %v488_v4  ;;  %v482_v51 = vmax.f32 %v480_v8, %v481_v52 }
 0x138   : > { %v476_v3 = vrot.slane %v475_v22, 2  ;;  %v496_v17 = vmax.f32 %v494_v63, %v495_v53 }
 0x139   : > { %v490_v60 = vrot.slane %v489_v1, 2  ;;  %v483_v9 = vrot.slane %v482_v51, 2 }
 0x13a   : > { %v477_v61 = vmax.f32 %v475_v22, %v476_v3  ;;  %v497_v58 = vrot.slane %v496_v17, 2 }
 0x13b   : > { %v491_v59 = vmax.f32 %v489_v1, %v490_v60  ;;  %v484_v27 = vmax.f32 %v482_v51, %v483_v9 }
 0x13c   : > { %v478_v55 = vrot.slane %v477_v61, 1  ;;  %v498_v50 = vmax.f32 %v496_v17, %v497_v58 }
 0x13d   : > { %v492_v56 = vrot.slane %v491_v59, 1  ;;  %v485_v48 = vrot.slane %v484_v27, 1 }
 0x13e   : > { %v479_v54 = vmax.f32 %v477_v61, %v478_v55  ;;  %v499_v49 = vrot.slane %v498_v50, 1 }
 0x13f   : > { %v493_v46 = vmax.f32 %v491_v59, %v492_v56  ;;  %v486_v47 = vmax.f32 %v484_v27, %v485_v48 }
 0x140   : > { %v501_v0 = vsub.f32 %v385_v13, %v479_v54  ;;  %v503_v57 = vsub.f32 %v391_v44, %v479_v54  ;;  %v500_v4 = vmax.f32 %v498_v50, %v499_v49 }
 0x141   : > { %v505_v52 = vsub.f32 %v462_v18, %v493_v46  ;;  %v507_v8 = vsub.f32 %v468_v62, %v493_v46  ;;  %v502_v53 = vsub.f32 %v387_v35, %v486_v47  ;;  %v504_v63 = vsub.f32 %v393_v26, %v486_v47 }
 0x142   : > { %v509_v39 = vmul.f32 1.442695, %v501_v0  ;;  %v513_v22 = vmul.f32 1.442695, %v503_v57  ;;  %v506_v3 = vsub.f32 %v464_v40, %v500_v4  ;;  %v508_v60 = vsub.f32 %v470_v31, %v500_v4 }
 0x143   : > { %v517_v9 = vmul.f32 1.442695, %v505_v52  ;;  %v521_v51 = vmul.f32 1.442695, %v507_v8  ;;  %v511_v58 = vmul.f32 1.442695, %v502_v53 }
 0x144   : > { %2132 = vpow2.f32 %v509_v39  ;;  %v515_v55 = vmul.f32 1.442695, %v504_v63  ;;  %v519_v56 = vmul.f32 1.442695, %v506_v3  ;;  %v523_v48 = vmul.f32 1.442695, %v508_v60 }
 0x145   : > { %2134 = vpow2.f32 %v513_v22 }
 0x146   : > { %2136 = vpow2.f32 %v517_v9 }
 0x147   : > { %2138 = vpow2.f32 %v521_v51 }
 0x148   : > { %2140 = vpow2.f32 %v511_v58 }
 0x149   : > { %2142 = vpow2.f32 %v515_v55 }
 0x14a   : > { %2144 = vpow2.f32 %v519_v56  ;;  %v566_v56 = vlaneseq }
 0x14b   : > { %2146 = vpow2.f32 %v523_v48 }
 0x14e   : > { %v2133_v46 = vpop.eup %2132 }
 0x14f   : > { %v2135_v47 = vpop.eup %2134 }
 0x150   : > { %v2137_v49 = vpop.eup %2136  ;;  %v525_v50 = vadd.f32 %v2135_v47, %v2133_v46 }
 0x151   : > { %v2139_v54 = vpop.eup %2138 }
 0x152   : > { %v2141_v59 = vpop.eup %2140  ;;  %v526_v61 = vrot.slane %v525_v50, 4  ;;  %v539_v62 = vadd.f32 %v2139_v54, %v2137_v49 }
 0x153   : > { %v2143_v17 = vpop.eup %2142 }
 0x154   : > { %v2145_v26 = vpop.eup %2144  ;;  %v527_v27 = vadd.f32 %v526_v61, %v525_v50  ;;  %v540_v31 = vrot.slane %v539_v62, 4  ;;  %v532_v13 = vadd.f32 %v2143_v17, %v2141_v59 }
 0x155   : > { %v2147_v35 = vpop.eup %2146 }
 0x156   : > { %v528_v18 = vrot.slane %v527_v27, 2  ;;  %v541_v40 = vadd.f32 %v540_v31, %v539_v62  ;;  %v533_v44 = vrot.slane %v532_v13, 4  ;;  %v546_v1 = vadd.f32 %v2147_v35, %v2145_v26 }
 0x157   : > { %v2644_v62 = vand.u32 127, %v566_v56 }
 0x158   : > { %v529_v0 = vadd.f32 %v528_v18, %v527_v27  ;;  %v542_v57 = vrot.slane %v541_v40, 2  ;;  %v534_v4 = vadd.f32 %v533_v44, %v532_v13  ;;  %v547_v52 = vrot.slane %v546_v1, 4 }
 0x159   : > { %v568_v27 = vadd.s32 128, %v2644_v62 }
 0x15a   : > { %v530_v8 = vrot.slane %v529_v0, 1  ;;  %v543_v53 = vadd.f32 %v542_v57, %v541_v40  ;;  %v535_v63 = vrot.slane %v534_v4, 2  ;;  %v548_v39 = vadd.f32 %v547_v52, %v546_v1 }
 0x15b   : > { %vm573_vm0 = vcmp.lt.s32.totalorder %v568_v27, 192 }
 0x15c   : > { %v531_v22 = vadd.f32 %v530_v8, %v529_v0  ;;  %v544_v3 = vrot.slane %v543_v53, 1  ;;  %v536_v60 = vadd.f32 %v535_v63, %v534_v4  ;;  %v549_v9 = vrot.slane %v548_v39, 2  ;;  %vm2649_vm1 = vmpackc.low %vm573_vm0, %vm573_vm0 }
 0x15e   : > { %2148 = vrcp.f32 %v531_v22  ;;  %v545_v51 = vadd.f32 %v544_v3, %v543_v53  ;;  %v537_v58 = vrot.slane %v536_v60, 1  ;;  %v550_v55 = vadd.f32 %v549_v9, %v548_v39 }
 0x160   : > { %2150 = vrcp.f32 %v545_v51  ;;  %v538_v48 = vadd.f32 %v537_v58, %v536_v60  ;;  %v551_v50 = vrot.slane %v550_v55, 1  ;;  %v3680_v58 = vld [vmem:[#allocation38_spill] sm:$0xff] }
 0x162   : > { %2152 = vrcp.f32 %v538_v48  ;;  %v552_v61 = vadd.f32 %v551_v50, %v550_v55  ;;  %v3681_v55 = vld [vmem:[#allocation35_spill] sm:$0xff]  ;;  %v3682_v48 = vld [vmem:[#allocation37_spill] sm:$0xff] }
 0x163   : > { %v3683_v50 = vld [vmem:[#allocation39_spill] sm:$0xff] }
 0x164   : > { %2154 = vrcp.f32 %v552_v61  ;;  %v2251_v61 = vmov 1966171168  }
 0x165   : > { %v737_v27 = vunpack.c.l.s4 %v2251_v61 }
 0x168   : > { %v2149_v31 = vpop.eup %2148 }
 0x169   : > { %v554_v13 = vmul.f32 %v2149_v31, %v2133_v46  ;;  %v557_v18 = vmul.f32 %v2149_v31, %v2135_v47  ;;  %v2788_v31 = vshrl.u32 %v566_v56, 7 }
 0x16a   : > { %v2151_v40 = vpop.eup %2150 }
 0x16b   : > { %v560_v44 = vmul.f32 %v2151_v40, %v2137_v49  ;;  %v563_v1 = vmul.f32 %v2151_v40, %v2139_v54  ;;  %v2063_v0 = vpack.c.bf16 %v557_v18, %v554_v13  ;;  %v2794_v40 = vsub.s32 1, %v2788_v31 }
 0x16c   : > { %v2153_v57 = vpop.eup %2152  ;;  %v2809_v56 = vsub.s32 6, %v2788_v31 }
 0x16d   : > { %v556_v4 = vmul.f32 %v2153_v57, %v2141_v59  ;;  %v558_v52 = vmul.f32 %v2153_v57, %v2143_v17  ;;  %v2068_v8 = vpack.c.bf16 %v563_v1, %v560_v44  ;;  %v2806_v57 = vsub.s32 5, %v2788_v31 }
 0x16e   : > { %v2155_v53 = vpop.eup %2154 }
 0x16f   : > { %v2060_v39 = vpack.c.bf16 %v558_v52, %v556_v4  ;;  %v562_v22 = vmul.f32 %v2155_v53, %v2145_v26  ;;  %v564_v46 = vmul.f32 %v2155_v53, %v2147_v35  ;;  %v579_v47 = vsel %vm573_vm0, %v556_v4, 0.0  ;;  %v3678_v26 = vld [vmem:[#allocation36_spill] sm:$0xff]  ;;  %v3679_v35 = vld [vmem:[#allocation33_spill] sm:$0xff] }
 0x170   : > { %v588_v3 = vadd.f32 %v579_v47, %v554_v13  ;;  %v581_v49 = vsel %vm573_vm0, %v558_v52, 0.0  ;;  %v738_v13 = vunpack.c.0.s8 %v737_v27  ;;  %v2812_v4 = vsub.s32 7, %v2788_v31 }
 0x171   : > { %2062 = vmatprep.subr.msk.bf16.mxu0 %vm2649_vm1, %v2060_v39  ;;  %v2065_v54 = vpack.c.bf16 %v564_v46, %v562_v22  ;;  %v583_v59 = vsel %vm573_vm0, %v562_v22, 0.0  ;;  %v585_v17 = vsel %vm573_vm0, %v564_v46, 0.0  ;;  %v591_v60 = vadd.f32 %v581_v49, %v557_v18 }
 0x172   : > { %v594_v9 = vadd.f32 %v583_v59, %v560_v44  ;;  %2064 = vmatpush1.bf16.xpose.msra.mxu0 %v2063_v0  ;;  %589 = vadd.xlane.f32.xlu0 %v588_v3  ;;  %v597_v51 = vadd.f32 %v585_v17, %v563_v1  ;;  %v2791_v18 = vsub.s32 0, %v2788_v31  ;;  %v2797_v44 = vsub.s32 2, %v2788_v31 }
 0x173   : > { %2067 = vmatprep.subr.msk.bf16.mxu1 %vm2649_vm1, %v2065_v54  ;;  %v2800_v1 = vsub.s32 3, %v2788_v31  ;;  %v2803_v0 = vsub.s32 4, %v2788_v31  ;;  %v2815_v52 = vsub.s32 %v738_v13, %v2788_v31 }
 0x174   : > { %2069 = vmatpush1.bf16.xpose.msra.mxu1 %v2068_v8  ;;  %595 = vadd.xlane.f32.xlu1 %v594_v9 }
 0x176   : > { %592 = vadd.xlane.f32.xlu0 %v591_v60 }
 0x178   : > { %598 = vadd.xlane.f32.xlu1 %v597_v51 }
 0x179   : > { %1092 = vmatmul.mubr.f32.vlgmr.msra.gmra.mrb[4].mxu0 %v2392_v6  ;;  %v3651_v6 = vld [vmem:[#allocation7_spill] sm:$0xff] }
 0x17a   : > { %1096 = vmatprep.mubr.f32.mxu0 %v2381_v2  ;;  %v2250_v2 = vmov 0  }
 0x17b   : > { %1237 = vmatmul.mubr.f32.vlgmr.msra.gmra.mrb[4].mxu1 %v2402_v10  ;;  %2130 = vset.pattern.permute.xlu0 %v2250_v2  ;;  %v3653_v10 = vld [vmem:[#allocation12_spill] sm:$0xff] }
 0x17c   : > { %1241 = vmatprep.mubr.f32.mxu1 %v2389_v5  ;;  %2131 = vset.pattern.permute.xlu1 %v2250_v2  ;;  %v3650_v5 = vld [vmem:[#allocation8_spill] sm:$0xff] }
 0x17d   : > { %1097 = vmatmul.mubr.f32.gmra.mrb[6].mxu0 %v2395_v7  ;;  %v3652_v7 = vld [vmem:[#allocation10_spill] sm:$0xff] }
 0x17e   : > { %1101 = vmatprep.mubr.f32.mxu0 %v2408_v12  ;;  %v3655_v12 = vld [vmem:[#allocation14_spill] sm:$0xff] }
 0x17f   : > { %1242 = vmatmul.mubr.f32.gmra.mrb[6].mxu1 %v2405_v11  ;;  %v3654_v11 = vld [vmem:[#allocation9_spill] sm:$0xff] }
 0x180   : > { %1246 = vmatprep.mubr.f32.mxu1 %v2416_v15  ;;  %v3657_v15 = vld [vmem:[#allocation13_spill] sm:$0xff] }
 0x181   : > { %1102 = vmatmul.mubr.f32.gmra.mrb[8].mxu0 %v2426_v19  ;;  %v3659_v19 = vld [vmem:[#allocation16_spill] sm:$0xff] }
 0x182   : > { %1106 = vmatprep.mubr.f32.mxu0 %v2413_v14  ;;  %v3656_v14 = vld [vmem:[#allocation11_spill] sm:$0xff] }
 0x183   : > { %1247 = vmatmul.mubr.f32.gmra.mrb[8].mxu1 %v2432_v21  ;;  %v3661_v21 = vld [vmem:[#allocation18_spill] sm:$0xff] }
 0x184   : > { %1251 = vmatprep.mubr.f32.mxu1 %v2419_v16  ;;  %v3658_v16 = vmov 0.0  }
 0x185   : > { %1107 = vmatmul.mubr.f32.gmra.mrb[10].mxu0 %v2429_v20  ;;  %218 = vst.msk [vmem:[#allocation2] sm:$0xff] %vm217_vm2, %v3658_v16  ;;  %219 = vst.msk [vmem:[#allocation2 + $0x8] sm:$0xff] %vm217_vm2, %v3658_v16  ;;  %v3660_v20 = vld [vmem:[#allocation15_spill] sm:$0xff] }
 0x186   : > { %1111 = vmatprep.mubr.f32.mxu0 %v2440_v24  ;;  %220 = vst.msk [vmem:[#allocation2 + $0x10] sm:$0xff] %vm217_vm2, %v3658_v16  ;;  %221 = vst.msk [vmem:[#allocation2 + $0x18] sm:$0xff] %vm217_vm2, %v3658_v16  ;;  %v3663_v24 = vld [vmem:[#allocation17_spill] sm:$0xff] }
 0x187   : > { %1252 = vmatmul.mubr.f32.gmra.mrb[10].mxu1 %v2437_v23  ;;  %222 = vst.msk [vmem:[#allocation2 + $0x20] sm:$0xff] %vm217_vm2, %v3658_v16  ;;  %223 = vst.msk [vmem:[#allocation2 + $0x28] sm:$0xff] %vm217_vm2, %v3658_v16  ;;  %v3662_v23 = vld [vmem:[#allocation20_spill] sm:$0xff] }
 0x188   : > { %1256 = vmatprep.mubr.f32.mxu1 %v2450_v28  ;;  %224 = vst.msk [vmem:[#allocation2 + $0x30] sm:$0xff] %vm217_vm2, %v3658_v16  ;;  %225 = vst.msk [vmem:[#allocation2 + $0x38] sm:$0xff] %vm217_vm2, %v3658_v16  ;;  %v3665_v28 = vld [vmem:[#allocation19_spill] sm:$0xff] }
 0x189   : > { %1112 = vmatmul.mubr.f32.gmra.mrb[12].mxu0 %v2456_v30  ;;  %226 = vst.msk [vmem:[#allocation2 + $0x40] sm:$0xff] %vm217_vm2, %v3658_v16  ;;  %227 = vst.msk [vmem:[#allocation2 + $0x48] sm:$0xff] %vm217_vm2, %v3658_v16  ;;  %v3667_v30 = vld [vmem:[#allocation24_spill] sm:$0xff] }
 0x18a   : > { %1116 = vmatprep.mubr.f32.mxu0 %v2443_v25  ;;  %228 = vst.msk [vmem:[#allocation2 + $0x50] sm:$0xff] %vm217_vm2, %v3658_v16  ;;  %229 = vst.msk [vmem:[#allocation2 + $0x58] sm:$0xff] %vm217_vm2, %v3658_v16  ;;  %v3664_v25 = vld [vmem:[#allocation22_spill] sm:$0xff] }
 0x18b   : > { %1257 = vmatmul.mubr.f32.gmra.mrb[12].mxu1 %v2464_v33  ;;  %230 = vst.msk [vmem:[#allocation2 + $0x60] sm:$0xff] %vm217_vm2, %v3658_v16  ;;  %231 = vst.msk [vmem:[#allocation2 + $0x68] sm:$0xff] %vm217_vm2, %v3658_v16  ;;  %v3669_v33 = vld [vmem:[#allocation26_spill] sm:$0xff] }
 0x18c   : > { %1261 = vmatprep.mubr.f32.mxu1 %v2453_v29  ;;  %232 = vst.msk [vmem:[#allocation2 + $0x70] sm:$0xff] %vm217_vm2, %v3658_v16  ;;  %233 = vst.msk [vmem:[#allocation2 + $0x78] sm:$0xff] %vm217_vm2, %v3658_v16  ;;  %v3666_v29 = vld [vmem:[#allocation21_spill] sm:$0xff] }
 0x18d   : > { %1117 = vmatmul.mubr.f32.gmra.mrb[14].mxu0 %v2461_v32  ;;  %234 = vst.msk [vmem:[#allocation2 + $0x80] sm:$0xff] %vm217_vm2, %v3658_v16  ;;  %235 = vst.msk [vmem:[#allocation2 + $0x88] sm:$0xff] %vm217_vm2, %v3658_v16  ;;  %v3668_v32 = vld [vmem:[#allocation23_spill] sm:$0xff] }
 0x18e   : > { %1121 = vmatprep.mubr.f32.mxu0 %v2472_v36  ;;  %236 = vst.msk [vmem:[#allocation2 + $0x90] sm:$0xff] %vm217_vm2, %v3658_v16  ;;  %237 = vst.msk [vmem:[#allocation2 + $0x98] sm:$0xff] %vm217_vm2, %v3658_v16  ;;  %v3671_v36 = vld [vmem:[#allocation25_spill] sm:$0xff] }
 0x18f   : > { %1262 = vmatmul.mubr.f32.gmra.mrb[14].mxu1 %v2467_v34  ;;  %238 = vst.msk [vmem:[#allocation2 + $0xa0] sm:$0xff] %vm217_vm2, %v3658_v16  ;;  %239 = vst.msk [vmem:[#allocation2 + $0xa8] sm:$0xff] %vm217_vm2, %v3658_v16  ;;  %v3670_v34 = vld [vmem:[#allocation28_spill] sm:$0xff] }
 0x190   : > { %1266 = vmatprep.mubr.f32.mxu1 %v2478_v38  ;;  %240 = vst.msk [vmem:[#allocation2 + $0xb0] sm:$0xff] %vm217_vm2, %v3658_v16  ;;  %241 = vst.msk [vmem:[#allocation2 + $0xb8] sm:$0xff] %vm217_vm2, %v3658_v16  ;;  %v3673_v38 = vld [vmem:[#allocation27_spill] sm:$0xff] }
 0x191   : > { %1122 = vmatmul.mubr.f32.gmra.mrb[16].mxu0 %v2488_v42  ;;  %242 = vst.msk [vmem:[#allocation2 + $0xc0] sm:$0xff] %vm217_vm2, %v3658_v16  ;;  %243 = vst.msk [vmem:[#allocation2 + $0xc8] sm:$0xff] %vm217_vm2, %v3658_v16  ;;  %v3675_v42 = vld [vmem:[#allocation32_spill] sm:$0xff] }
 0x192   : > { %1126 = vmatprep.mubr.f32.mxu0 %v2475_v37  ;;  %244 = vst.msk [vmem:[#allocation2 + $0xd0] sm:$0xff] %vm217_vm2, %v3658_v16  ;;  %245 = vst.msk [vmem:[#allocation2 + $0xd8] sm:$0xff] %vm217_vm2, %v3658_v16  ;;  %v3672_v37 = vld [vmem:[#allocation30_spill] sm:$0xff] }
 0x193   : > { %1267 = vmatmul.mubr.f32.gmra.mrb[16].mxu1 %v2496_v45  ;;  %246 = vst.msk [vmem:[#allocation2 + $0xe0] sm:$0xff] %vm217_vm2, %v3658_v16  ;;  %247 = vst.msk [vmem:[#allocation2 + $0xe8] sm:$0xff] %vm217_vm2, %v3658_v16  ;;  %v3677_v45 = vld [vmem:[#allocation34_spill] sm:$0xff] }
 0x194   : > { %1271 = vmatprep.mubr.f32.mxu1 %v2485_v41  ;;  %248 = vst.msk [vmem:[#allocation2 + $0xf0] sm:$0xff] %vm217_vm2, %v3658_v16  ;;  %249 = vst.msk [vmem:[#allocation2 + $0xf8] sm:$0xff] %vm217_vm2, %v3658_v16  ;;  %v3674_v41 = vld [vmem:[#allocation29_spill] sm:$0xff] }
 0x195   : > { %1127 = vmatmul.mubr.f32.gmra.mrb[18].mxu0 %v2491_v43  ;;  %v3676_v43 = vld [vmem:[#allocation31_spill] sm:$0xff]  ;;  %251 = vst.msk [vmem:[#allocation3] sm:$0x1] %vm250_vm3, %v3658_v16  ;;  %252 = vst.msk [vmem:[#allocation3 + $0x1] sm:$0x1] %vm250_vm3, %v3658_v16 }
 0x196   : > { %1131 = vmatprep.mubr.f32.mxu0 %v3650_v5 }
 0x197   : > { %1272 = vmatmul.mubr.f32.gmra.mrb[18].mxu1 %v3651_v6 }
 0x198   : > { %1276 = vmatprep.mubr.f32.mxu1 %v3652_v7 }
 0x199   : > { %1132 = vmatmul.mubr.f32.gmra.mrb[20].mxu0 %v3653_v10 }
 0x19a   : > { %1136 = vmatprep.mubr.f32.mxu0 %v3654_v11 }
 0x19b   : > { %1277 = vmatmul.mubr.f32.gmra.mrb[20].mxu1 %v3655_v12 }
 0x19c   : > { %1281 = vmatprep.mubr.f32.mxu1 %v3656_v14 }
 0x19d   : > { %1137 = vmatmul.mubr.f32.gmra.mrb[22].mxu0 %v3657_v15 }
 0x19e   : > { %1141 = vmatprep.mubr.f32.mxu0 %v3659_v19 }
 0x19f   : > { %1282 = vmatmul.mubr.f32.gmra.mrb[22].mxu1 %v3660_v20 }
 0x1a0   : > { %1286 = vmatprep.mubr.f32.mxu1 %v3661_v21 }
 0x1a1   : > { %1142 = vmatmul.mubr.f32.gmra.mrb[24].mxu0 %v3662_v23 }
 0x1a2   : > { %1146 = vmatprep.mubr.f32.mxu0 %v3663_v24 }
 0x1a3   : > { %1287 = vmatmul.mubr.f32.gmra.mrb[24].mxu1 %v3664_v25 }
 0x1a4   : > { %1291 = vmatprep.mubr.f32.mxu1 %v3665_v28 }
 0x1a5   : > { %1147 = vmatmul.mubr.f32.gmra.mrb[26].mxu0 %v3666_v29 }
 0x1a6   : > { %1151 = vmatprep.mubr.f32.mxu0 %v3667_v30 }
 0x1a7   : > { %1292 = vmatmul.mubr.f32.gmra.mrb[26].mxu1 %v3668_v32 }
 0x1a8   : > { %1296 = vmatprep.mubr.f32.mxu1 %v3669_v33 }
 0x1a9   : > { %1152 = vmatmul.mubr.f32.gmra.mrb[28].mxu0 %v3670_v34 }
 0x1aa   : > { %1156 = vmatprep.mubr.f32.mxu0 %v3671_v36 }
 0x1ab   : > { %1297 = vmatmul.mubr.f32.gmra.mrb[28].mxu1 %v3672_v37 }
 0x1ac   : > { %1301 = vmatprep.mubr.f32.mxu1 %v3673_v38 }
 0x1ad   : > { %1157 = vmatmul.mubr.f32.gmra.mrb[30].mxu0 %v3674_v41 }
 0x1ae   : > { %1161 = vmatprep.mubr.f32.mxu0 %v3675_v42 }
 0x1af   : > { %1302 = vmatmul.mubr.f32.gmra.mrb[30].mxu1 %v3676_v43 }
 0x1b0   : > { %1306 = vmatprep.mubr.f32.mxu1 %v3677_v45 }
 0x1b1   : > { %1162 = vmatmul.mubr.f32.gmra.mrb[32].mxu0 %v3678_v26 }
 0x1b2   : > { %1166 = vmatprep.mubr.f32.mxu0 %v3679_v35 }
 0x1b3   : > { %1307 = vmatmul.mubr.f32.gmra.mrb[32].mxu1 %v3680_v58 }
 0x1b4   : > { %1311 = vmatprep.mubr.f32.mxu1 %v3681_v55 }
 0x1b5   : > { %1167 = vmatmul.mubr.f32.gmra.mrb[34].mxu0 %v3682_v48 }
 0x1b7   : > { %1312 = vmatmul.mubr.f32.gmra.mrb[34].mxu1 %v3683_v50 }
 0x1ff   : > { %v590_v8 = vpop.xlane.xlu0 %589 }
 0x200   : > { %v607_v53 = vrot.slane %v590_v8, %v2791_v18  ;;  %v611_v63 = vrot.slane %v590_v8, %v2794_v40  ;;  %v615_v39 = vrot.slane %v590_v8, %v2797_v44  ;;  %v619_v22 = vrot.slane %v590_v8, %v2800_v1 }
 0x201   : > { %v596_v46 = vpop.xlane.xlu1 %595  ;;  %v623_v47 = vrot.slane %v590_v8, %v2803_v0  ;;  %v627_v3 = vrot.slane %v590_v8, %v2806_v57  ;;  %v631_v49 = vrot.slane %v590_v8, %v2809_v56  ;;  %v635_v54 = vrot.slane %v590_v8, %v2812_v4 }
 0x202   : > { %v732_v59 = vcombine.low %v607_v53, %v611_v63  ;;  %v733_v17 = vcombine.low %v615_v39, %v619_v22  ;;  %v671_v60 = vrot.slane %v596_v46, %v2791_v18  ;;  %v675_v9 = vrot.slane %v596_v46, %v2794_v40 }
 0x203   : > { %v593_v51 = vpop.xlane.xlu0 %592  ;;  %v734_v2 = vcombine.low %v623_v47, %v627_v3  ;;  %v735_v5 = vcombine.low %v631_v49, %v635_v54  ;;  %v679_v6 = vrot.slane %v596_v46, %v2797_v44  ;;  %v683_v7 = vrot.slane %v596_v46, %v2800_v1 }
 0x204   : > { %v742_v10 = vrot.slane %v732_v59, %v2815_v52  ;;  %v749_v11 = vrot.slane %v733_v17, %v2815_v52  ;;  %v639_v12 = vrot.slane %v593_v51, %v2791_v18  ;;  %v643_v14 = vrot.slane %v593_v51, %v2794_v40 }
 0x205   : > { %v756_v15 = vrot.slane %v734_v2, %v2815_v52  ;;  %v763_v19 = vrot.slane %v735_v5, %v2815_v52  ;;  %v647_v20 = vrot.slane %v593_v51, %v2797_v44  ;;  %v651_v21 = vrot.slane %v593_v51, %v2800_v1  ;;  %v599_v41 = vpop.xlane.xlu1 %598 }
 0x206   : > { %v764_v23 = vcombine.low %v742_v10, %v749_v11  ;;  %v655_v24 = vrot.slane %v593_v51, %v2803_v0  ;;  %v659_v25 = vrot.slane %v593_v51, %v2806_v57  ;;  %v663_v28 = vrot.slane %v593_v51, %v2809_v56 }
 0x207   : > { %v765_v29 = vcombine.low %v756_v15, %v763_v19  ;;  %v667_v30 = vrot.slane %v593_v51, %v2812_v4  ;;  %v781_v32 = vcombine.low %v639_v12, %v643_v14  ;;  %v782_v33 = vcombine.low %v647_v20, %v651_v21 }
 0x208   : > { %v772_v34 = vrot.slane %v764_v23, %v2815_v52  ;;  %v783_v36 = vcombine.low %v655_v24, %v659_v25  ;;  %v687_v37 = vrot.slane %v596_v46, %v2803_v0  ;;  %v691_v38 = vrot.slane %v596_v46, %v2806_v57  ;;  %v995_v24 = vld [vmem:[#allocation2] sm:$0xff] }
 0x209   : > { %v779_v42 = vrot.slane %v765_v29, %v2815_v52  ;;  %v784_v43 = vcombine.low %v663_v28, %v667_v30  ;;  %v791_v45 = vrot.slane %v781_v32, %v2815_v52  ;;  %v798_v26 = vrot.slane %v782_v33, %v2815_v52  ;;  %v1011_v28 = vld [vmem:[#allocation2 + $0x80] sm:$0xff]  ;;  %v996_v32 = vld [vmem:[#allocation2 + $0x8] sm:$0xff] }
 0x20a   : > { %v805_v35 = vrot.slane %v783_v36, %v2815_v52  ;;  %v695_v58 = vrot.slane %v596_v46, %v2809_v56  ;;  %v699_v55 = vrot.slane %v596_v46, %v2812_v4  ;;  %v830_v48 = vcombine.low %v671_v60, %v675_v9 }
 0x20b   : > { %v780_v50 = vcombine.low %v772_v34, %v779_v42  ;;  %v812_v61 = vrot.slane %v784_v43, %v2815_v52  ;;  %v813_v27 = vcombine.low %v791_v45, %v798_v26  ;;  %v831_v13 = vcombine.low %v679_v6, %v683_v7  ;;  %v997_v42 = vld [vmem:[#allocation2 + $0x10] sm:$0xff] }
 0x20c   : > { %v832_v8 = vcombine.low %v687_v37, %v691_v38  ;;  %v833_v53 = vcombine.low %v695_v58, %v699_v55  ;;  %v840_v63 = vrot.slane %v830_v48, %v2815_v52  ;;  %v703_v39 = vrot.slane %v599_v41, %v2791_v18  ;;  %v1012_v37 = vld [vmem:[#allocation2 + $0x88] sm:$0xff]  ;;  %v1013_v58 = vld [vmem:[#allocation2 + $0x90] sm:$0xff] }
 0x20d   : > { %929 = vperm.xlu0 %2130, %v780_v50   ;;  %v814_v22 = vcombine.low %v805_v35, %v812_v61  ;;  %v821_v47 = vrot.slane %v813_v27, %v2815_v52  ;;  %v847_v3 = vrot.slane %v831_v13, %v2815_v52  ;;  %v707_v46 = vrot.slane %v599_v41, %v2794_v40  ;;  %v998_v50 = vld [vmem:[#allocation2 + $0x18] sm:$0xff] }
 0x20e   : > { %v854_v49 = vrot.slane %v832_v8, %v2815_v52  ;;  %v861_v54 = vrot.slane %v833_v53, %v2815_v52  ;;  %v711_v59 = vrot.slane %v599_v41, %v2797_v44  ;;  %v715_v17 = vrot.slane %v599_v41, %v2800_v1  ;;  %v1014_v53 = vld [vmem:[#allocation2 + $0x98] sm:$0xff] }
 0x20f   : > { %v828_v60 = vrot.slane %v814_v22, %v2815_v52  ;;  %v862_v9 = vcombine.low %v840_v63, %v847_v3  ;;  %v719_v18 = vrot.slane %v599_v41, %v2803_v0  ;;  %v723_v51 = vrot.slane %v599_v41, %v2806_v57  ;;  %v999_v22 = vld [vmem:[#allocation2 + $0x20] sm:$0xff] }
 0x210   : > { %v863_v2 = vcombine.low %v854_v49, %v861_v54  ;;  %v727_v5 = vrot.slane %v599_v41, %v2809_v56  ;;  %v731_v40 = vrot.slane %v599_v41, %v2812_v4  ;;  %v879_v6 = vcombine.low %v703_v39, %v707_v46  ;;  %v1015_v54 = vld [vmem:[#allocation2 + $0xa0] sm:$0xff] }
 0x211   : > { %v829_v7 = vcombine.low %v821_v47, %v828_v60  ;;  %v870_v10 = vrot.slane %v862_v9, %v2815_v52  ;;  %v880_v11 = vcombine.low %v711_v59, %v715_v17  ;;  %v881_v44 = vcombine.low %v719_v18, %v723_v51  ;;  %v1000_v60 = vld [vmem:[#allocation2 + $0x28] sm:$0xff] }
 0x212   : > { %v877_v1 = vrot.slane %v863_v2, %v2815_v52  ;;  %v882_v12 = vcombine.low %v727_v5, %v731_v40  ;;  %v889_v14 = vrot.slane %v879_v6, %v2815_v52  ;;  %v1016_v5 = vld [vmem:[#allocation2 + $0xa8] sm:$0xff] }
 0x213   : > { %932 = vperm.xlu1 %2131, %v829_v7   ;;  %v896_v0 = vrot.slane %v880_v11, %v2815_v52  ;;  %v903_v57 = vrot.slane %v881_v44, %v2815_v52  ;;  %v1001_v7 = vld [vmem:[#allocation2 + $0x30] sm:$0xff] }
 0x214   : > { %v910_v56 = vrot.slane %v882_v12, %v2815_v52  ;;  %v878_v4 = vcombine.low %v870_v10, %v877_v1  ;;  %v1017_v12 = vld [vmem:[#allocation2 + $0xb0] sm:$0xff] }
 0x215   : > { %v911_v15 = vcombine.low %v889_v14, %v896_v0 }
 0x216   : > { %v912_v19 = vcombine.low %v903_v57, %v910_v56  ;;  %v1002_v57 = vld [vmem:[#allocation2 + $0x38] sm:$0xff] }
 0x217   : > { %935 = vperm.xlu1 %2131, %v878_v4   ;;  %v919_v20 = vrot.slane %v911_v15, %v2815_v52 }
 0x218   : > { %v926_v21 = vrot.slane %v912_v19, %v2815_v52 }
 0x21a   : > { %v927_v23 = vcombine.low %v919_v20, %v926_v21  ;;  %v1018_v20 = vld [vmem:[#allocation2 + $0xb8] sm:$0xff] }
 0x21c   : > { %938 = vperm.xlu1 %2131, %v927_v23  }
 0x24c   : > { %v1093_v25 = vpop.f32.mrb[4].mxu0 }
 0x24d   : > { %v1317_v29 = vadd.f32 %v1093_v25, %v995_v24  ;;  %v1095_v30 = vpop.f32.mrb[5].mxu0  ;;  %v1003_v24 = vld [vmem:[#allocation2 + $0x40] sm:$0xff] }
 0x24e   : > { %v1238_v33 = vpop.f32.mrb[4].mxu1 }
 0x24f   : > { %1350 = vst.msk [vmem:[#allocation2] sm:$0xff] %vm217_vm2, %v1317_v29  ;;  %v1333_v16 = vadd.f32 %v1238_v33, %v1011_v28  ;;  %v1240_v34 = vpop.f32.mrb[5].mxu1 }
 0x250   : > { %v1098_v36 = vpop.f32.mrb[6].mxu0  ;;  %v1004_v34 = vld [vmem:[#allocation2 + $0x48] sm:$0xff] }
 0x251   : > { %v1318_v38 = vadd.f32 %v1098_v36, %v996_v32  ;;  %v1100_v41 = vpop.f32.mrb[7].mxu0  ;;  %1366 = vst.msk [vmem:[#allocation2 + $0x80] sm:$0xff] %vm217_vm2, %v1333_v16  ;;  %v1019_v32 = vld [vmem:[#allocation2 + $0xc0] sm:$0xff] }
 0x252   : > { %v1243_v43 = vpop.f32.mrb[6].mxu1 }
 0x253   : > { %1351 = vst.msk [vmem:[#allocation2 + $0x8] sm:$0xff] %vm217_vm2, %v1318_v38  ;;  %v1334_v45 = vadd.f32 %v1243_v43, %v1012_v37  ;;  %v1245_v26 = vpop.f32.mrb[7].mxu1 }
 0x254   : > { %v1103_v35 = vpop.f32.mrb[8].mxu0  ;;  %v1005_v26 = vld [vmem:[#allocation2 + $0x50] sm:$0xff] }
 0x255   : > { %v1319_v55 = vadd.f32 %v1103_v35, %v997_v42  ;;  %v1105_v48 = vpop.f32.mrb[9].mxu0  ;;  %1367 = vst.msk [vmem:[#allocation2 + $0x88] sm:$0xff] %vm217_vm2, %v1334_v45  ;;  %v1020_v42 = vld [vmem:[#allocation2 + $0xc8] sm:$0xff] }
 0x256   : > { %v1248_v61 = vpop.f32.mrb[8].mxu1 }
 0x257   : > { %1352 = vst.msk [vmem:[#allocation2 + $0x10] sm:$0xff] %vm217_vm2, %v1319_v55  ;;  %v1335_v27 = vadd.f32 %v1248_v61, %v1013_v58  ;;  %v1250_v13 = vpop.f32.mrb[9].mxu1 }
 0x258   : > { %v1108_v8 = vpop.f32.mrb[10].mxu0  ;;  %v1006_v13 = vld [vmem:[#allocation2 + $0x58] sm:$0xff] }
 0x259   : > { %v1320_v63 = vadd.f32 %v1108_v8, %v998_v50  ;;  %v1110_v39 = vpop.f32.mrb[11].mxu0  ;;  %1368 = vst.msk [vmem:[#allocation2 + $0x90] sm:$0xff] %vm217_vm2, %v1335_v27  ;;  %v1021_v50 = vld [vmem:[#allocation2 + $0xd0] sm:$0xff] }
 0x25a   : > { %v1253_v47 = vpop.f32.mrb[10].mxu1 }
 0x25b   : > { %1353 = vst.msk [vmem:[#allocation2 + $0x18] sm:$0xff] %vm217_vm2, %v1320_v63  ;;  %v1336_v3 = vadd.f32 %v1253_v47, %v1014_v53  ;;  %v1255_v46 = vpop.f32.mrb[11].mxu1 }
 0x25c   : > { %v1113_v49 = vpop.f32.mrb[12].mxu0  ;;  %v1007_v46 = vld [vmem:[#allocation2 + $0x60] sm:$0xff] }
 0x25d   : > { %v1321_v59 = vadd.f32 %v1113_v49, %v999_v22  ;;  %v1115_v17 = vpop.f32.mrb[13].mxu0  ;;  %1369 = vst.msk [vmem:[#allocation2 + $0x98] sm:$0xff] %vm217_vm2, %v1336_v3  ;;  %v1022_v22 = vld [vmem:[#allocation2 + $0xd8] sm:$0xff] }
 0x25e   : > { %v1258_v9 = vpop.f32.mrb[12].mxu1 }
 0x25f   : > { %1354 = vst.msk [vmem:[#allocation2 + $0x20] sm:$0xff] %vm217_vm2, %v1321_v59  ;;  %v1337_v18 = vadd.f32 %v1258_v9, %v1015_v54  ;;  %v1260_v51 = vpop.f32.mrb[13].mxu1 }
 0x260   : > { %v1118_v2 = vpop.f32.mrb[14].mxu0  ;;  %v1008_v51 = vld [vmem:[#allocation2 + $0x68] sm:$0xff] }
 0x261   : > { %v1322_v40 = vadd.f32 %v1118_v2, %v1000_v60  ;;  %v1120_v6 = vpop.f32.mrb[15].mxu0  ;;  %1370 = vst.msk [vmem:[#allocation2 + $0xa0] sm:$0xff] %vm217_vm2, %v1337_v18  ;;  %v1023_v60 = vld [vmem:[#allocation2 + $0xe0] sm:$0xff] }
 0x262   : > { %v1263_v10 = vpop.f32.mrb[14].mxu1 }
 0x263   : > { %1355 = vst.msk [vmem:[#allocation2 + $0x28] sm:$0xff] %vm217_vm2, %v1322_v40  ;;  %v1338_v11 = vadd.f32 %v1263_v10, %v1016_v5  ;;  %v1265_v44 = vpop.f32.mrb[15].mxu1 }
 0x264   : > { %v1123_v1 = vpop.f32.mrb[16].mxu0  ;;  %v1009_v44 = vld [vmem:[#allocation2 + $0x70] sm:$0xff] }
 0x265   : > { %v1323_v14 = vadd.f32 %v1123_v1, %v1001_v7  ;;  %v1125_v0 = vpop.f32.mrb[17].mxu0  ;;  %1371 = vst.msk [vmem:[#allocation2 + $0xa8] sm:$0xff] %vm217_vm2, %v1338_v11  ;;  %v1024_v7 = vld [vmem:[#allocation2 + $0xe8] sm:$0xff] }
 0x266   : > { %v1268_v56 = vpop.f32.mrb[16].mxu1 }
 0x267   : > { %1356 = vst.msk [vmem:[#allocation2 + $0x30] sm:$0xff] %vm217_vm2, %v1323_v14  ;;  %v1339_v4 = vadd.f32 %v1268_v56, %v1017_v12  ;;  %v1270_v15 = vpop.f32.mrb[17].mxu1 }
 0x268   : > { %v1128_v19 = vpop.f32.mrb[18].mxu0  ;;  %v1010_v15 = vld [vmem:[#allocation2 + $0x78] sm:$0xff] }
 0x269   : > { %v1324_v21 = vadd.f32 %v1128_v19, %v1002_v57  ;;  %v1130_v23 = vpop.f32.mrb[19].mxu0  ;;  %1372 = vst.msk [vmem:[#allocation2 + $0xb0] sm:$0xff] %vm217_vm2, %v1339_v4  ;;  %v1025_v57 = vld [vmem:[#allocation2 + $0xf0] sm:$0xff] }
 0x26a   : > { %v1273_v25 = vpop.f32.mrb[18].mxu1 }
 0x26b   : > { %1357 = vst.msk [vmem:[#allocation2 + $0x38] sm:$0xff] %vm217_vm2, %v1324_v21  ;;  %v1340_v28 = vadd.f32 %v1273_v25, %v1018_v20  ;;  %v1275_v29 = vpop.f32.mrb[19].mxu1 }
 0x26c   : > { %v1133_v30 = vpop.f32.mrb[20].mxu0 }
 0x26d   : > { %v1325_v33 = vadd.f32 %v1133_v30, %v1003_v24  ;;  %v1135_v16 = vpop.f32.mrb[21].mxu0  ;;  %1373 = vst.msk [vmem:[#allocation2 + $0xb8] sm:$0xff] %vm217_vm2, %v1340_v28  ;;  %v1026_v24 = vld [vmem:[#allocation2 + $0xf8] sm:$0xff]  ;;  %v944_v30 = vadd.s32 4294967288, %v2644_v62 }
 0x26e   : > { %v1278_v36 = vpop.f32.mrb[20].mxu1  ;;  %v942_v16 = vsub.s32 %v2644_v62, %v2788_v31 }
 0x26f   : > { %1358 = vst.msk [vmem:[#allocation2 + $0x40] sm:$0xff] %vm217_vm2, %v1325_v33  ;;  %v1341_v37 = vadd.f32 %v1278_v36, %v1019_v32  ;;  %v1280_v38 = vpop.f32.mrb[21].mxu1 }
 0x270   : > { %v1138_v41 = vpop.f32.mrb[22].mxu0 }
 0x271   : > { %v1326_v43 = vadd.f32 %v1138_v41, %v1004_v34  ;;  %v1140_v45 = vpop.f32.mrb[23].mxu0  ;;  %1374 = vst.msk [vmem:[#allocation2 + $0xc0] sm:$0xff] %vm217_vm2, %v1341_v37  ;;  %v947_v34 = vsub.s32 %v944_v30, %v2788_v31 }
 0x272   : > { %v1283_v35 = vpop.f32.mrb[22].mxu1 }
 0x273   : > { %1359 = vst.msk [vmem:[#allocation2 + $0x48] sm:$0xff] %vm217_vm2, %v1326_v43  ;;  %v1342_v58 = vadd.f32 %v1283_v35, %v1020_v42  ;;  %v1285_v55 = vpop.f32.mrb[23].mxu1 }
 0x274   : > { %v1143_v48 = vpop.f32.mrb[24].mxu0 }
 0x275   : > { %v1327_v61 = vadd.f32 %v1143_v48, %v1005_v26  ;;  %v1145_v27 = vpop.f32.mrb[25].mxu0  ;;  %1375 = vst.msk [vmem:[#allocation2 + $0xc8] sm:$0xff] %vm217_vm2, %v1342_v58  ;;  %v586_v26 = vld [vmem:[#allocation3] sm:$0x1] }
 0x276   : > { %v1288_v8 = vpop.f32.mrb[24].mxu1 }
 0x277   : > { %1360 = vst.msk [vmem:[#allocation2 + $0x50] sm:$0xff] %vm217_vm2, %v1327_v61  ;;  %v1343_v53 = vadd.f32 %v1288_v8, %v1021_v50  ;;  %v1290_v63 = vpop.f32.mrb[25].mxu1  ;;  %v587_v61 = vld [vmem:[#allocation3 + $0x1] sm:$0x1]  ;;  %v1386_v8 = vld [vmem:[%s3573_s2 + $0x8] sm:$0xff] }
 0x278   : > { %v1148_v39 = vpop.f32.mrb[26].mxu0 }
 0x279   : > { %v1328_v47 = vadd.f32 %v1148_v39, %v1006_v13  ;;  %v1150_v3 = vpop.f32.mrb[27].mxu0  ;;  %1376 = vst.msk [vmem:[#allocation2 + $0xd0] sm:$0xff] %vm217_vm2, %v1343_v53  ;;  %v2921_v13 = vld [vmem:[%s3573_s2] sm:$0xff]  ;;  %v2931_v39 = vld [vmem:[%s3573_s2 + $0x10] sm:$0xff] }
 0x27a   : > { %v1293_v49 = vpop.f32.mrb[26].mxu1 }
 0x27b   : > { %1361 = vst.msk [vmem:[#allocation2 + $0x58] sm:$0xff] %vm217_vm2, %v1328_v47  ;;  %v1344_v54 = vadd.f32 %v1293_v49, %v1022_v22  ;;  %v1295_v59 = vpop.f32.mrb[27].mxu1  ;;  %v2940_v47 = vld [vmem:[%s3573_s2 + $0x18] sm:$0xff]  ;;  %v1401_v49 = vld [vmem:[#allocation2] sm:$0xff] }
 0x27c   : > { %v1153_v17 = vpop.f32.mrb[28].mxu0 }
 0x27d   : > { %v1329_v9 = vadd.f32 %v1153_v17, %v1007_v46  ;;  %v1155_v18 = vpop.f32.mrb[29].mxu0  ;;  %1377 = vst.msk [vmem:[#allocation2 + $0xd8] sm:$0xff] %vm217_vm2, %v1344_v54  ;;  %v2947_v46 = vld [vmem:[%s3573_s2 + $0x20] sm:$0xff]  ;;  %v1402_v54 = vld [vmem:[#allocation2 + $0x8] sm:$0xff] }
 0x27e   : > { %v1298_v2 = vpop.f32.mrb[28].mxu1  ;;  %v1403_v18 = vld [vmem:[#allocation2 + $0x10] sm:$0xff] }
 0x27f   : > { %1362 = vst.msk [vmem:[#allocation2 + $0x60] sm:$0xff] %vm217_vm2, %v1329_v9  ;;  %v1345_v5 = vadd.f32 %v1298_v2, %v1023_v60  ;;  %v1300_v40 = vpop.f32.mrb[29].mxu1  ;;  %v2958_v9 = vld [vmem:[%s3573_s2 + $0x28] sm:$0xff] }
 0x280   : > { %v1158_v6 = vpop.f32.mrb[30].mxu0  ;;  %v1404_v40 = vld [vmem:[#allocation2 + $0x18] sm:$0xff] }
 0x281   : > { %v1330_v10 = vadd.f32 %v1158_v6, %v1008_v51  ;;  %v1160_v11 = vpop.f32.mrb[31].mxu0  ;;  %1378 = vst.msk [vmem:[#allocation2 + $0xe0] sm:$0xff] %vm217_vm2, %v1345_v5  ;;  %v2967_v5 = vld [vmem:[%s3573_s2 + $0x30] sm:$0xff]  ;;  %v2972_v6 = vld [vmem:[%s3573_s2 + $0x38] sm:$0xff] }
 0x282   : > { %v1303_v1 = vpop.f32.mrb[30].mxu1 }
 0x283   : > { %1363 = vst.msk [vmem:[#allocation2 + $0x68] sm:$0xff] %vm217_vm2, %v1330_v10  ;;  %v1346_v12 = vadd.f32 %v1303_v1, %v1024_v7  ;;  %v1305_v14 = vpop.f32.mrb[31].mxu1  ;;  %v1405_v1 = vld [vmem:[#allocation2 + $0x20] sm:$0xff] }
 0x284   : > { %v1163_v0 = vpop.f32.mrb[32].mxu0 }
 0x285   : > { %v1331_v56 = vadd.f32 %v1163_v0, %v1009_v44  ;;  %v1165_v4 = vpop.f32.mrb[33].mxu0  ;;  %1379 = vst.msk [vmem:[#allocation2 + $0xe8] sm:$0xff] %vm217_vm2, %v1346_v12 }
 0x286   : > { %v1308_v19 = vpop.f32.mrb[32].mxu1 }
 0x287   : > { %1364 = vst.msk [vmem:[#allocation2 + $0x70] sm:$0xff] %vm217_vm2, %v1331_v56  ;;  %v1347_v20 = vadd.f32 %v1308_v19, %v1025_v57  ;;  %v1310_v21 = vpop.f32.mrb[33].mxu1  ;;  %v2991_v57 = vld [vmem:[%s3573_s2 + $0x40] sm:$0xff]  ;;  %v1406_v56 = vld [vmem:[#allocation2 + $0x28] sm:$0xff] }
 0x288   : > { %v1168_v23 = vpop.f32.mrb[34].mxu0 }
 0x289   : > { %v1332_v25 = vadd.f32 %v1168_v23, %v1010_v15  ;;  %1380 = vst.msk [vmem:[#allocation2 + $0xf0] sm:$0xff] %vm217_vm2, %v1347_v20  ;;  %v1170_v28 = vpop.f32.mrb[35].mxu0  ;;  %v2998_v15 = vld [vmem:[%s3573_s2 + $0x70] sm:$0xff] }
 0x28a   : > { %v1313_v29 = vpop.f32.mrb[34].mxu1  ;;  %v1408_v28 = vld [vmem:[#allocation2 + $0x38] sm:$0xff] }
 0x28b   : > { %1365 = vst.msk [vmem:[#allocation2 + $0x78] sm:$0xff] %vm217_vm2, %v1332_v25  ;;  %v1348_v32 = vadd.f32 %v1313_v29, %v1026_v24  ;;  %v1315_v33 = vpop.f32.mrb[35].mxu1  ;;  %v3009_v24 = vld [vmem:[%s3573_s2 + $0x48] sm:$0xff]  ;;  %v1407_v25 = vld [vmem:[#allocation2 + $0x30] sm:$0xff] }
 0x28c   : > { %v930_v36 = vpop.permute.xlu0 %929 }
 0x28d   : > { %1381 = vst.msk [vmem:[#allocation2 + $0xf8] sm:$0xff] %vm217_vm2, %v1348_v32  ;;  %v943_v38 = vrot.slane %v930_v36, %v942_v16  ;;  %v3016_v32 = vld [vmem:[%s3573_s2 + $0x78] sm:$0xff] }
 0x292   : > { %v933_v37 = vpop.permute.xlu1 %932 }
 0x293   : > { %v948_v41 = vrot.slane %v933_v37, %v947_v34 }
 0x295   : > { %v950_v42 = vsel %vm949_vm4, %v948_v41, %v943_v38  ;;  %v3030_v38 = vld [vmem:[%s3573_s2 + $0x50] sm:$0xff]  ;;  %v1409_v41 = vld [vmem:[#allocation2 + $0x40] sm:$0xff] }
 0x296   : > { %v966_v43 = vrot.slane %v950_v42, %v2815_v52  ;;  %v936_v45 = vpop.permute.xlu1 %935 }
 0x297   : > { %v954_v48 = vrot.slane %v936_v45, %v942_v16  ;;  %v3035_v45 = vld [vmem:[%s3573_s2 + $0x58] sm:$0xff] }
 0x298   : > { %v973_v35 = vrot.slane %v966_v43, %v2815_v52  ;;  %v1415_v43 = vld [vmem:[#allocation2 + $0x70] sm:$0xff] }
 0x29a   : > { %v990_v58 = vadd.f32 %v973_v35, %v586_v26 }
 0x29b   : > { %v939_v55 = vpop.permute.xlu1 %938 }
 0x29c   : > { %993 = vst.msk [vmem:[#allocation3] sm:$0x1] %vm250_vm3, %v990_v58  ;;  %v958_v62 = vrot.slane %v939_v55, %v947_v34 }
 0x29e   : > { %v959_v50 = vsel %vm949_vm4, %v958_v62, %v954_v48  ;;  %v3049_v62 = vld [vmem:[%s3573_s2 + $0x60] sm:$0xff] }
 0x29f   : > { %v980_v31 = vrot.slane %v959_v50, %v2815_v52  ;;  %v1410_v50 = vld [vmem:[#allocation2 + $0x48] sm:$0xff] }
 0x2a1   : > { %v987_v27 = vrot.slane %v980_v31, %v2815_v52 }
 0x2a3   : > { %v2926_v53 = vld [vmem:[#allocation3] ss:$0 sm:$0xff]  ;;  %v991_v63 = vadd.f32 %v987_v27, %v587_v61 }
 0x2a4   : > { %v1447_v52 = vmul.f32 %v2926_v53, %v2921_v13  ;;  %v1448_v22 = vmul.f32 %v2926_v53, %v1386_v8  ;;  %v1449_v3 = vmul.f32 %v2926_v53, %v2931_v39  ;;  %v1450_v59 = vmul.f32 %v2926_v53, %v2940_v47 }
 0x2a5   : > { %994 = vst.msk [vmem:[#allocation3 + $0x1] sm:$0x1] %vm250_vm3, %v991_v63  ;;  %v1451_v51 = vmul.f32 %v2926_v53, %v2947_v46  ;;  %v1452_v7 = vmul.f32 %v2926_v53, %v2958_v9  ;;  %v1453_v12 = vmul.f32 %v2926_v53, %v2967_v5  ;;  %v1454_v4 = vmul.f32 %v2926_v53, %v2972_v6 }
 0x2a6   : > { %v2951_v17 = vsub.f32 %v1401_v49, %v1447_v52  ;;  %v2953_v60 = vsub.f32 %v1402_v54, %v1448_v22  ;;  %v2962_v2 = vsub.f32 %v1403_v18, %v1449_v3  ;;  %v2976_v10 = vsub.f32 %v1404_v40, %v1450_v59  ;;  %v1411_v54 = vld [vmem:[#allocation2 + $0x50] sm:$0xff]  ;;  %v1418_v40 = vld [vmem:[#allocation2 + $0x88] sm:$0xff] }
 0x2a7   : > { %v2984_v14 = vsub.f32 %v1405_v1, %v1451_v51  ;;  %v3000_v19 = vsub.f32 %v1406_v56, %v1452_v7  ;;  %v1455_v33 = vmul.f32 %v2926_v53, %v2991_v57  ;;  %v3020_v16 = vsub.f32 %v1407_v25, %v1453_v12  ;;  %v1416_v51 = vld [vmem:[#allocation2 + $0x78] sm:$0xff]  ;;  %v1417_v12 = vld [vmem:[#allocation2 + $0x80] sm:$0xff] }
 0x2a8   : > { %v1511_v11 = vmul.f32 %v2951_v17, %v2951_v17  ;;  %v1512_v44 = vmul.f32 %v2953_v60, %v2953_v60  ;;  %v1513_v0 = vmul.f32 %v2962_v2, %v2962_v2  ;;  %v1514_v20 = vmul.f32 %v2976_v10, %v2976_v10 }
 0x2a9   : > { %v1515_v34 = vmul.f32 %v2984_v14, %v2984_v14  ;;  %v1461_v37 = vmul.f32 %v2926_v53, %v2998_v15  ;;  %v1456_v26 = vmul.f32 %v2926_v53, %v3009_v24  ;;  %v3039_v35 = vsub.f32 %v1408_v28, %v1454_v4 }
 0x2aa   : > { %v1543_v21 = vsel %vm217_vm2, %v1511_v11, 0.0  ;;  %v1544_v23 = vsel %vm217_vm2, %v1512_v44, 0.0  ;;  %v1546_v36 = vsel %vm217_vm2, %v1513_v0, 0.0  ;;  %v1516_v58 = vmul.f32 %v3000_v19, %v3000_v19  ;;  %v1412_v0 = vld [vmem:[#allocation2 + $0x58] sm:$0xff] }
 0x2ab   : > { %v1545_v29 = vadd.f32 %v1544_v23, %v1543_v21  ;;  %v1548_v55 = vsel %vm217_vm2, %v1514_v20, 0.0  ;;  %v1462_v48 = vmul.f32 %v2926_v53, %v3016_v32  ;;  %v1457_v63 = vmul.f32 %v2926_v53, %v3030_v38 }
 0x2ac   : > { %v3011_v30 = vld [vmem:[#allocation3 + $0x1] ss:$0 sm:$0xff]  ;;  %v3056_v52 = vsub.f32 %v1409_v41, %v1455_v33  ;;  %v1517_v22 = vmul.f32 %v3020_v16, %v3020_v16  ;;  %v1550_v3 = vsel %vm217_vm2, %v1515_v34, 0.0  ;;  %v3061_v49 = vsub.f32 %v1415_v43, %v1461_v37  ;;  %v1414_v33 = vld [vmem:[#allocation2 + $0x68] sm:$0xff] }
 0x2ad   : > { %v1547_v42 = vadd.f32 %v1546_v36, %v1545_v29  ;;  %v1464_v31 = vmul.f32 %v3011_v30, %v1386_v8  ;;  %v1463_v27 = vmul.f32 %v3011_v30, %v2921_v13  ;;  %v3066_v8 = vld [vmem:[%s3573_s2 + $0x68] sm:$0xff]  ;;  %v1458_v13 = vmul.f32 %v2926_v53, %v3035_v45  ;;  %v1419_v29 = vld [vmem:[#allocation2 + $0x90] sm:$0xff]  ;;  %v1413_v36 = vld [vmem:[#allocation2 + $0x60] sm:$0xff] }
 0x2ae   : > { %v1465_v18 = vmul.f32 %v3011_v30, %v2931_v39  ;;  %v1459_v7 = vmul.f32 %v2926_v53, %v3049_v62  ;;  %v3074_v11 = vsub.f32 %v1410_v50, %v1456_v26  ;;  %v1518_v44 = vmul.f32 %v3039_v35, %v3039_v35  ;;  %v1420_v26 = vld [vmem:[#allocation2 + $0x98] sm:$0xff] }
 0x2af   : > { %v1549_v61 = vadd.f32 %v1548_v55, %v1547_v42  ;;  %v1552_v1 = vsel %vm217_vm2, %v1516_v58, 0.0  ;;  %v3079_v56 = vsub.f32 %v1418_v40, %v1464_v31  ;;  %v1466_v39 = vmul.f32 %v3011_v30, %v2940_v47 }
 0x2b0   : > { %v3083_v20 = vsub.f32 %v1417_v12, %v1463_v27  ;;  %v1460_v21 = vmul.f32 %v2926_v53, %v3066_v8  ;;  %v3087_v23 = vsub.f32 %v1411_v54, %v1457_v63  ;;  %v1519_v25 = vmul.f32 %v3056_v52, %v3056_v52 }
 0x2b1   : > { %v1551_v59 = vadd.f32 %v1550_v3, %v1549_v61  ;;  %v1554_v28 = vsel %vm217_vm2, %v1517_v22, 0.0  ;;  %v3092_v34 = vsub.f32 %v1416_v51, %v1462_v48  ;;  %v1467_v47 = vmul.f32 %v3011_v30, %v2947_v46  ;;  %v1421_v22 = vld [vmem:[#allocation2 + $0xa0] sm:$0xff]  ;;  %v1422_v3 = vld [vmem:[#allocation2 + $0xa8] sm:$0xff] }
 0x2b2   : > { %v3096_v41 = vsub.f32 %v1419_v29, %v1465_v18  ;;  %v3098_v42 = vsub.f32 %v1412_v0, %v1458_v13  ;;  %v1520_v53 = vmul.f32 %v3074_v11, %v3074_v11  ;;  %v1556_v43 = vsel %vm217_vm2, %v1518_v44, 0.0 }
 0x2b3   : > { %v1553_v4 = vadd.f32 %v1552_v1, %v1551_v59  ;;  %v1468_v58 = vmul.f32 %v3011_v30, %v2958_v9  ;;  %v3105_v48 = vsub.f32 %v1420_v26, %v1466_v39  ;;  %v1527_v50 = vmul.f32 %v3083_v20, %v3083_v20  ;;  %v1423_v39 = vld [vmem:[#allocation2 + $0xb0] sm:$0xff] }
 0x2b4   : > { %v1528_v46 = vmul.f32 %v3079_v56, %v3079_v56  ;;  %v3111_v31 = vsub.f32 %v1413_v36, %v1459_v7  ;;  %v3113_v61 = vsub.f32 %v1414_v33, %v1460_v21  ;;  %v1521_v27 = vmul.f32 %v3087_v23, %v3087_v23 }
 0x2b5   : > { %v1555_v37 = vadd.f32 %v1554_v28, %v1553_v4  ;;  %v1558_v63 = vsel %vm217_vm2, %v1519_v25, 0.0  ;;  %v1469_v54 = vmul.f32 %v3011_v30, %v2967_v5  ;;  %v3120_v13 = vsub.f32 %v1421_v22, %v1467_v47  ;;  %v1424_v47 = vld [vmem:[#allocation2 + $0xb8] sm:$0xff] }
 0x2b6   : > { %v1529_v59 = vmul.f32 %v3096_v41, %v3096_v41  ;;  %v1522_v18 = vmul.f32 %v3098_v42, %v3098_v42  ;;  %v1560_v51 = vsel %vm217_vm2, %v1520_v53, 0.0  ;;  %v1470_v40 = vmul.f32 %v3011_v30, %v2972_v6  ;;  %v1425_v53 = vld [vmem:[#allocation2 + $0xc0] sm:$0xff] }
 0x2b7   : > { %v1557_v55 = vadd.f32 %v1556_v43, %v1555_v37  ;;  %v3129_v7 = vsub.f32 %v1422_v3, %v1468_v58  ;;  %v1530_v1 = vmul.f32 %v3105_v48, %v3105_v48  ;;  %v1580_v5 = vsel %vm217_vm2, %v1527_v50, 0.0 }
 0x2b8   : > { %v1581_v12 = vsel %vm217_vm2, %v1528_v46, 0.0  ;;  %v1523_v0 = vmul.f32 %v3111_v31, %v3111_v31  ;;  %v1562_v4 = vsel %vm217_vm2, %v1521_v27, 0.0  ;;  %v1471_v21 = vmul.f32 %v3011_v30, %v2991_v57 }
 0x2b9   : > { %v1559_v9 = vadd.f32 %v1558_v63, %v1557_v55  ;;  %v1582_v6 = vadd.f32 %v1581_v12, %v1580_v5  ;;  %v3140_v28 = vsub.f32 %v1423_v39, %v1469_v54  ;;  %v1531_v29 = vmul.f32 %v3120_v13, %v3120_v13  ;;  %v1426_v63 = vld [vmem:[#allocation2 + $0xc8] sm:$0xff]  ;;  %v1428_v39 = vld [vmem:[#allocation2 + $0xd8] sm:$0xff] }
 0x2ba   : > { %v1583_v33 = vsel %vm217_vm2, %v1529_v59, 0.0  ;;  %v1524_v36 = vmul.f32 %v3113_v61, %v3113_v61  ;;  %v1564_v37 = vsel %vm217_vm2, %v1522_v18, 0.0  ;;  %v1472_v43 = vmul.f32 %v3011_v30, %v3009_v24 }
 0x2bb   : > { %v1561_v44 = vadd.f32 %v1560_v51, %v1559_v9  ;;  %v1584_v57 = vadd.f32 %v1583_v33, %v1582_v6  ;;  %v3150_v58 = vsub.f32 %v1424_v47, %v1470_v40  ;;  %v1532_v55 = vmul.f32 %v3129_v7, %v3129_v7  ;;  %v1427_v40 = vld [vmem:[#allocation2 + $0xd0] sm:$0xff] }
 0x2bc   : > { %v1585_v50 = vsel %vm217_vm2, %v1530_v1, 0.0  ;;  %v1525_v46 = vmul.f32 %v3061_v49, %v3061_v49  ;;  %v1566_v27 = vsel %vm217_vm2, %v1523_v0, 0.0  ;;  %v1473_v22 = vmul.f32 %v3011_v30, %v3030_v38 }
 0x2bd   : > { %v1563_v25 = vadd.f32 %v1562_v4, %v1561_v44  ;;  %v1586_v9 = vadd.f32 %v1585_v50, %v1584_v57  ;;  %v3160_v3 = vsub.f32 %v1425_v53, %v1471_v21  ;;  %v1533_v54 = vmul.f32 %v3140_v28, %v3140_v28 }
 0x2be   : > { %v1587_v59 = vsel %vm217_vm2, %v1531_v29, 0.0  ;;  %v1526_v18 = vmul.f32 %v3092_v34, %v3092_v34  ;;  %v1568_v51 = vsel %vm217_vm2, %v1524_v36, 0.0  ;;  %v1474_v44 = vmul.f32 %v3011_v30, %v3035_v45 }
 0x2bf   : > { %v1565_v26 = vadd.f32 %v1564_v37, %v1563_v25  ;;  %v1588_v1 = vadd.f32 %v1587_v59, %v1586_v9  ;;  %v3170_v5 = vsub.f32 %v1426_v63, %v1472_v43  ;;  %v1534_v12 = vmul.f32 %v3150_v58, %v3150_v58  ;;  %v1429_v37 = vld [vmem:[#allocation2 + $0xe0] sm:$0xff]  ;;  %v1431_v9 = vld [vmem:[#allocation2 + $0xf0] sm:$0xff] }
 0x2c0   : > { %v1589_v0 = vsel %vm217_vm2, %v1532_v55, 0.0  ;;  %v1570_v4 = vsel %vm217_vm2, %v1525_v46, 0.0  ;;  %v1475_v21 = vmul.f32 %v3011_v30, %v3049_v62  ;;  %v3178_v29 = vsub.f32 %v1427_v40, %v1473_v22  ;;  %v1430_v55 = vld [vmem:[#allocation2 + $0xe8] sm:$0xff]  ;;  %v1432_v40 = vld [vmem:[#allocation2 + $0xf8] sm:$0xff] }
 0x2c1   : > { %v1567_v24 = vadd.f32 %v1566_v27, %v1565_v26  ;;  %v1590_v6 = vadd.f32 %v1589_v0, %v1588_v1  ;;  %v1535_v45 = vmul.f32 %v3160_v3, %v3160_v3  ;;  %v1591_v33 = vsel %vm217_vm2, %v1533_v54, 0.0 }
 0x2c2   : > { %v1572_v36 = vsel %vm217_vm2, %v1526_v18, 0.0  ;;  %v1476_v47 = vmul.f32 %v3011_v30, %v3066_v8  ;;  %v3186_v57 = vsub.f32 %v1428_v39, %v1474_v44  ;;  %v1536_v62 = vmul.f32 %v3170_v5, %v3170_v5 }
 0x2c3   : > { %v1569_v38 = vadd.f32 %v1568_v51, %v1567_v24  ;;  %v1592_v53 = vadd.f32 %v1591_v33, %v1590_v6  ;;  %v1593_v26 = vsel %vm217_vm2, %v1534_v12, 0.0  ;;  %v1477_v50 = vmul.f32 %v3011_v30, %v2998_v15 }
 0x2c4   : > { %v3193_v63 = vsub.f32 %v1429_v37, %v1475_v21  ;;  %v1537_v8 = vmul.f32 %v3178_v29, %v3178_v29  ;;  %v1595_v22 = vsel %vm217_vm2, %v1535_v45, 0.0  ;;  %v1478_v24 = vmul.f32 %v3011_v30, %v3016_v32 }
 0x2c5   : > { %v1571_v25 = vadd.f32 %v1570_v4, %v1569_v38  ;;  %v1594_v46 = vadd.f32 %v1593_v26, %v1592_v53  ;;  %v3200_v18 = vsub.f32 %v1430_v55, %v1476_v47  ;;  %v1538_v15 = vmul.f32 %v3186_v57, %v3186_v57 }
 0x2c6   : > { %v1597_v51 = vsel %vm217_vm2, %v1536_v62, 0.0  ;;  %v3205_v1 = vsub.f32 %v1431_v9, %v1477_v50  ;;  %v1539_v12 = vmul.f32 %v3193_v63, %v3193_v63  ;;  %v1599_v0 = vsel %vm217_vm2, %v1537_v8, 0.0 }
 0x2c7   : > { %v1573_v43 = vadd.f32 %v1572_v36, %v1571_v25  ;;  %v1596_v54 = vadd.f32 %v1595_v22, %v1594_v46  ;;  %v3210_v32 = vsub.f32 %v1432_v40, %v1478_v24  ;;  %v1540_v39 = vmul.f32 %v3200_v18, %v3200_v18 }
 0x2c8   : > { %v1601_v21 = vsel %vm217_vm2, %v1538_v15, 0.0  ;;  %v1541_v45 = vmul.f32 %v3205_v1, %v3205_v1  ;;  %v1603_v33 = vsel %vm217_vm2, %v1539_v12, 0.0 }
 0x2c9   : > { %v1574_v27 = vrot.slane %v1573_v43, 4  ;;  %v1598_v44 = vadd.f32 %v1597_v51, %v1596_v54  ;;  %v1542_v47 = vmul.f32 %v3210_v32, %v3210_v32  ;;  %v1605_v53 = vsel %vm217_vm2, %v1540_v39, 0.0 }
 0x2ca   : > { %v1607_v26 = vsel %vm217_vm2, %v1541_v45, 0.0 }
 0x2cb   : > { %v1575_v59 = vadd.f32 %v1574_v27, %v1573_v43  ;;  %v1600_v30 = vadd.f32 %v1599_v0, %v1598_v44  ;;  %v1609_v50 = vsel %vm217_vm2, %v1542_v47, 0.0 }
 0x2cd   : > { %v1576_v38 = vrot.slane %v1575_v59, 2  ;;  %v1602_v6 = vadd.f32 %v1601_v21, %v1600_v30 }
 0x2cf   : > { %v1577_v4 = vadd.f32 %v1576_v38, %v1575_v59  ;;  %v1604_v36 = vadd.f32 %v1603_v33, %v1602_v6 }
 0x2d1   : > { %v1578_v25 = vrot.slane %v1577_v4, 1  ;;  %v1606_v43 = vadd.f32 %v1605_v53, %v1604_v36 }
 0x2d3   : > { %v1579_v37 = vadd.f32 %v1578_v25, %v1577_v4  ;;  %v1608_v55 = vadd.f32 %v1607_v26, %v1606_v43 }
 0x2d5   : > { %v1617_v62 = vmax.f32 %v1579_v37, 1e-24  ;;  %v1610_v46 = vadd.f32 %v1609_v50, %v1608_v55 }
 0x2d7   : > { %2156 = vrsqrt.f32 %v1617_v62  ;;  %v1611_v27 = vrot.slane %v1610_v46, 4 }
 0x2d9   : > { %v1612_v8 = vadd.f32 %v1611_v27, %v1610_v46 }
 0x2db   : > { %v1613_v22 = vrot.slane %v1612_v8, 2 }
 0x2dd   : > { %v1614_v9 = vadd.f32 %v1613_v22, %v1612_v8 }
 0x2df   : > { %v1615_v51 = vrot.slane %v1614_v9, 1 }
 0x2e1   : > { %v3223_v24 = vpop.eup %2156  ;;  %v1616_v38 = vadd.f32 %v1615_v51, %v1614_v9 }
 0x2e2   : > { %v3227_v54 = vmul.f32 %v3223_v24, %v2953_v60  ;;  %v3231_v59 = vmul.f32 %v3223_v24, %v2951_v17  ;;  %v3235_v15 = vmul.f32 %v3223_v24, %v2976_v10  ;;  %v3247_v0 = vmul.f32 %v3223_v24, %v2984_v14 }
 0x2e3   : > { %v1618_v10 = vmax.f32 %v1616_v38, 1e-24  ;;  %v3254_v39 = vmul.f32 %v3223_v24, %v3000_v19  ;;  %v3261_v6 = vmul.f32 %v3223_v24, %v3020_v16  ;;  %v3268_v19 = vmul.f32 %v3223_v24, %v3039_v35 }
 0x2e4   : > { %v1654_v40 = vmul.f32 %v3227_v54, %v3227_v54  ;;  %v1653_v44 = vmul.f32 %v3231_v59, %v3231_v59  ;;  %v1656_v17 = vmul.f32 %v3235_v15, %v3235_v15  ;;  %v1657_v4 = vmul.f32 %v3247_v0, %v3247_v0 }
 0x2e5   : > { %2158 = vrsqrt.f32 %v1618_v10  ;;  %v1658_v14 = vmul.f32 %v3254_v39, %v3254_v39  ;;  %v1659_v45 = vmul.f32 %v3261_v6, %v3261_v6  ;;  %v1660_v35 = vmul.f32 %v3268_v19, %v3268_v19 }
 0x2e6   : > { %v1688_v12 = vsel %vm217_vm2, %v1654_v40, 0.0  ;;  %v1685_v60 = vsel %vm217_vm2, %v1653_v44, 0.0  ;;  %v1694_v30 = vsel %vm217_vm2, %v1656_v17, 0.0  ;;  %v1697_v21 = vsel %vm217_vm2, %v1657_v4, 0.0 }
 0x2e7   : > { %1689 = vadd.xlane.f32.xlu0 %v1688_v12  ;;  %1686 = vadd.xlane.f32.xlu1 %v1685_v60  ;;  %v1700_v25 = vsel %vm217_vm2, %v1658_v14, 0.0  ;;  %v1703_v47 = vsel %vm217_vm2, %v1659_v45, 0.0  ;;  %v3287_v53 = vmul.f32 %v3223_v24, %v3056_v52  ;;  %v1706_v62 = vsel %vm217_vm2, %v1660_v35, 0.0 }
 0x2e8   : > { %v3301_v52 = vmul.f32 %v3223_v24, %v3074_v11  ;;  %v3315_v11 = vmul.f32 %v3223_v24, %v3087_v23  ;;  %v3329_v23 = vmul.f32 %v3223_v24, %v3098_v42  ;;  %v3343_v42 = vmul.f32 %v3223_v24, %v3111_v31 }
 0x2e9   : > { %v1661_v26 = vmul.f32 %v3287_v53, %v3287_v53  ;;  %v3357_v31 = vmul.f32 %v3223_v24, %v3113_v61  ;;  %v3371_v61 = vmul.f32 %v3223_v24, %v3061_v49  ;;  %v3385_v49 = vmul.f32 %v3223_v24, %v3092_v34 }
 0x2ea   : > { %v1662_v27 = vmul.f32 %v3301_v52, %v3301_v52  ;;  %v1663_v51 = vmul.f32 %v3315_v11, %v3315_v11  ;;  %v1664_v12 = vmul.f32 %v3329_v23, %v3329_v23 }
 0x2eb   : > { %1695 = vadd.xlane.f32.xlu0 %v1694_v30  ;;  %v1709_v46 = vsel %vm217_vm2, %v1661_v26, 0.0  ;;  %v1665_v30 = vmul.f32 %v3343_v42, %v3343_v42  ;;  %v1667_v35 = vmul.f32 %v3371_v61, %v3371_v61  ;;  %v1668_v26 = vmul.f32 %v3385_v49, %v3385_v49 }
 0x2ec   : > { %v1712_v9 = vsel %vm217_vm2, %v1662_v27, 0.0  ;;  %v1715_v38 = vsel %vm217_vm2, %v1663_v51, 0.0  ;;  %v1718_v10 = vsel %vm217_vm2, %v1664_v12, 0.0 }
 0x2ed   : > { %v1721_v14 = vsel %vm217_vm2, %v1665_v30, 0.0 }
 0x2ef   : > { %1698 = vadd.xlane.f32.xlu0 %v1697_v21  ;;  %v3270_v33 = vpop.eup %2158 }
 0x2f0   : > { %v3274_v36 = vmul.f32 %v3270_v33, %v3083_v20  ;;  %v3278_v16 = vmul.f32 %v3270_v33, %v3079_v56  ;;  %v3294_v56 = vmul.f32 %v3223_v24, %v2962_v2  ;;  %v3308_v2 = vmul.f32 %v3270_v33, %v3096_v41 }
 0x2f1   : > { %v3322_v41 = vmul.f32 %v3270_v33, %v3105_v48  ;;  %v3336_v48 = vmul.f32 %v3270_v33, %v3120_v13  ;;  %v3350_v13 = vmul.f32 %v3270_v33, %v3129_v7  ;;  %v3364_v7 = vmul.f32 %v3270_v33, %v3140_v28 }
 0x2f2   : > { %v1669_v37 = vmul.f32 %v3274_v36, %v3274_v36  ;;  %v1670_v43 = vmul.f32 %v3278_v16, %v3278_v16  ;;  %v1655_v50 = vmul.f32 %v3294_v56, %v3294_v56  ;;  %v1671_v22 = vmul.f32 %v3308_v2, %v3308_v2 }
 0x2f3   : > { %1701 = vadd.xlane.f32.xlu0 %v1700_v25  ;;  %v1672_v44 = vmul.f32 %v3322_v41, %v3322_v41  ;;  %v1673_v17 = vmul.f32 %v3336_v48, %v3336_v48  ;;  %v1674_v21 = vmul.f32 %v3350_v13, %v3350_v13  ;;  %v1666_v25 = vmul.f32 %v3357_v31, %v3357_v31 }
 0x2f4   : > { %v1733_v20 = vsel %vm217_vm2, %v1669_v37, 0.0  ;;  %v1736_v55 = vsel %vm217_vm2, %v1670_v43, 0.0  ;;  %v1691_v8 = vsel %vm217_vm2, %v1655_v50, 0.0  ;;  %v1739_v40 = vsel %vm217_vm2, %v1671_v22, 0.0 }
 0x2f5   : > { %1734 = vadd.xlane.f32.xlu1 %v1733_v20  ;;  %v1742_v60 = vsel %vm217_vm2, %v1672_v44, 0.0  ;;  %v1745_v4 = vsel %vm217_vm2, %v1673_v17, 0.0  ;;  %v1748_v45 = vsel %vm217_vm2, %v1674_v21, 0.0  ;;  %v1675_v37 = vmul.f32 %v3364_v7, %v3364_v7 }
 0x2f6   : > { %v3378_v28 = vmul.f32 %v3270_v33, %v3150_v58  ;;  %v3392_v58 = vmul.f32 %v3270_v33, %v3160_v3  ;;  %v1730_v3 = vsel %vm217_vm2, %v1668_v26, 0.0  ;;  %v3410_v27 = vmul.f32 %v3270_v33, %v3178_v29 }
 0x2f7   : > { %1704 = vadd.xlane.f32.xlu0 %v1703_v47  ;;  %v1724_v47 = vsel %vm217_vm2, %v1666_v25, 0.0  ;;  %v1751_v20 = vsel %vm217_vm2, %v1675_v37, 0.0  ;;  %v3417_v22 = vmul.f32 %v3270_v33, %v3186_v57  ;;  %v3424_v29 = vmul.f32 %v3270_v33, %v3193_v63 }
 0x2f8   : > { %v1676_v43 = vmul.f32 %v3378_v28, %v3378_v28  ;;  %v1677_v24 = vmul.f32 %v3392_v58, %v3392_v58  ;;  %v3431_v57 = vmul.f32 %v3270_v33, %v3200_v18  ;;  %v3438_v63 = vmul.f32 %v3270_v33, %v3205_v1 }
 0x2f9   : > { %1737 = vadd.xlane.f32.xlu1 %v1736_v55  ;;  %v3402_v55 = vmul.f32 %v3270_v33, %v3170_v5  ;;  %v1679_v5 = vmul.f32 %v3410_v27, %v3410_v27  ;;  %v1680_v51 = vmul.f32 %v3417_v22, %v3417_v22  ;;  %v1681_v44 = vmul.f32 %v3424_v29, %v3424_v29 }
 0x2fa   : > { %v1754_v34 = vsel %vm217_vm2, %v1676_v43, 0.0  ;;  %v1757_v50 = vsel %vm217_vm2, %v1677_v24, 0.0  ;;  %v1682_v12 = vmul.f32 %v3431_v57, %v3431_v57  ;;  %v1683_v17 = vmul.f32 %v3438_v63, %v3438_v63 }
 0x2fb   : > { %1707 = vadd.xlane.f32.xlu0 %v1706_v62  ;;  %v1727_v62 = vsel %vm217_vm2, %v1667_v35, 0.0  ;;  %v3445_v18 = vmul.f32 %v3270_v33, %v3210_v32 }
 0x2fd   : > { %1692 = vadd.xlane.f32.xlu1 %v1691_v8  ;;  %v1684_v30 = vmul.f32 %v3445_v18, %v3445_v18 }
 0x2ff   : > { %1710 = vadd.xlane.f32.xlu0 %v1709_v46  ;;  %v1678_v46 = vmul.f32 %v3402_v55, %v3402_v55  ;;  %v1778_v1 = vsel %vm217_vm2, %v1684_v30, 0.0 }
 0x301   : > { %1740 = vadd.xlane.f32.xlu1 %v1739_v40  ;;  %v1760_v8 = vsel %vm217_vm2, %v1678_v46, 0.0  ;;  %v1766_v40 = vsel %vm217_vm2, %v1680_v51, 0.0 }
 0x303   : > { %1713 = vadd.xlane.f32.xlu0 %v1712_v9  ;;  %v1763_v9 = vsel %vm217_vm2, %v1679_v5, 0.0 }
 0x305   : > { %1743 = vadd.xlane.f32.xlu1 %v1742_v60  ;;  %v1772_v60 = vsel %vm217_vm2, %v1682_v12, 0.0 }
 0x307   : > { %1716 = vadd.xlane.f32.xlu0 %v1715_v38  ;;  %v1769_v38 = vsel %vm217_vm2, %v1681_v44, 0.0 }
 0x309   : > { %1746 = vadd.xlane.f32.xlu1 %v1745_v4 }
 0x30b   : > { %1719 = vadd.xlane.f32.xlu0 %v1718_v10  ;;  %v1775_v10 = vsel %vm217_vm2, %v1683_v17, 0.0 }
 0x30d   : > { %1749 = vadd.xlane.f32.xlu1 %v1748_v45 }
 0x30f   : > { %1722 = vadd.xlane.f32.xlu0 %v1721_v14 }
 0x311   : > { %1752 = vadd.xlane.f32.xlu1 %v1751_v20 }
 0x313   : > { %1725 = vadd.xlane.f32.xlu0 %v1724_v47 }
 0x315   : > { %1755 = vadd.xlane.f32.xlu1 %v1754_v34 }
 0x317   : > { %1728 = vadd.xlane.f32.xlu0 %v1727_v62 }
 0x319   : > { %1758 = vadd.xlane.f32.xlu1 %v1757_v50 }
 0x31b   : > { %1731 = vadd.xlane.f32.xlu0 %v1730_v3 }
 0x31d   : > { %1761 = vadd.xlane.f32.xlu1 %v1760_v8 }
 0x321   : > { %1764 = vadd.xlane.f32.xlu1 %v1763_v9 }
 0x325   : > { %1767 = vadd.xlane.f32.xlu1 %v1766_v40 }
 0x329   : > { %1770 = vadd.xlane.f32.xlu1 %v1769_v38 }
 0x32d   : > { %1773 = vadd.xlane.f32.xlu1 %v1772_v60 }
 0x331   : > { %1776 = vadd.xlane.f32.xlu1 %v1775_v10 }
 0x335   : > { %1779 = vadd.xlane.f32.xlu1 %v1778_v1 }
 0x374   : > { %v1690_v4 = vpop.xlane.xlu0 %1689  ;;  %v1687_v45 = vpop.xlane.xlu1 %1686 }
 0x375   : > { %v1781_v20 = vadd.f32 %v1690_v4, %v1687_v45 }
 0x378   : > { %v1696_v21 = vpop.xlane.xlu0 %1695 }
 0x37c   : > { %v1699_v14 = vpop.xlane.xlu0 %1698 }
 0x380   : > { %v1702_v25 = vpop.xlane.xlu0 %1701 }
 0x382   : > { %v1735_v47 = vpop.xlane.xlu1 %1734 }
 0x384   : > { %v1705_v37 = vpop.xlane.xlu0 %1704 }
 0x386   : > { %v1738_v32 = vpop.xlane.xlu1 %1737 }
 0x388   : > { %v1708_v35 = vpop.xlane.xlu0 %1707 }
 0x38a   : > { %v1693_v43 = vpop.xlane.xlu1 %1692 }
 0x38b   : > { %v1782_v62 = vadd.f32 %v1781_v20, %v1693_v43 }
 0x38c   : > { %v1711_v33 = vpop.xlane.xlu0 %1710 }
 0x38d   : > { %v1783_v34 = vadd.f32 %v1782_v62, %v1696_v21 }
 0x38e   : > { %v1741_v24 = vpop.xlane.xlu1 %1740 }
 0x38f   : > { %v1784_v3 = vadd.f32 %v1783_v34, %v1699_v14 }
 0x390   : > { %v1714_v26 = vpop.xlane.xlu0 %1713 }
 0x391   : > { %v1785_v46 = vadd.f32 %v1784_v3, %v1702_v25  ;;  %v1802_v25 = vadd.f32 %v1738_v32, %v1735_v47 }
 0x392   : > { %v1744_v8 = vpop.xlane.xlu1 %1743 }
 0x393   : > { %v1786_v5 = vadd.f32 %v1785_v46, %v1705_v37 }
 0x394   : > { %v1717_v50 = vpop.xlane.xlu0 %1716 }
 0x395   : > { %v1787_v51 = vadd.f32 %v1786_v5, %v1708_v35  ;;  %v1803_v35 = vadd.f32 %v1802_v25, %v1741_v24 }
 0x396   : > { %v1747_v40 = vpop.xlane.xlu1 %1746 }
 0x397   : > { %v1788_v44 = vadd.f32 %v1787_v51, %v1711_v33  ;;  %v1804_v33 = vadd.f32 %v1803_v35, %v1744_v8 }
 0x398   : > { %v1720_v9 = vpop.xlane.xlu0 %1719 }
 0x399   : > { %v1789_v12 = vadd.f32 %v1788_v44, %v1714_v26  ;;  %v1805_v46 = vadd.f32 %v1804_v33, %v1747_v40 }
 0x39a   : > { %v1750_v60 = vpop.xlane.xlu1 %1749 }
 0x39b   : > { %v1790_v17 = vadd.f32 %v1789_v12, %v1717_v50  ;;  %v1806_v5 = vadd.f32 %v1805_v46, %v1750_v60 }
 0x39c   : > { %v1723_v38 = vpop.xlane.xlu0 %1722 }
 0x39d   : > { %v1791_v30 = vadd.f32 %v1790_v17, %v1720_v9 }
 0x39e   : > { %v1753_v1 = vpop.xlane.xlu1 %1752 }
 0x39f   : > { %v1792_v4 = vadd.f32 %v1791_v30, %v1723_v38  ;;  %v1807_v44 = vadd.f32 %v1806_v5, %v1753_v1 }
 0x3a0   : > { %v1726_v10 = vpop.xlane.xlu0 %1725 }
 0x3a1   : > { %v1793_v21 = vadd.f32 %v1792_v4, %v1726_v10 }
 0x3a2   : > { %v1756_v20 = vpop.xlane.xlu1 %1755 }
 0x3a3   : > { %v1808_v12 = vadd.f32 %v1807_v44, %v1756_v20 }
 0x3a4   : > { %v1729_v45 = vpop.xlane.xlu0 %1728 }
 0x3a5   : > { %v1794_v14 = vadd.f32 %v1793_v21, %v1729_v45 }
 0x3a6   : > { %v1759_v62 = vpop.xlane.xlu1 %1758 }
 0x3a7   : > { %v1809_v47 = vadd.f32 %v1808_v12, %v1759_v62 }
 0x3a8   : > { %v1732_v43 = vpop.xlane.xlu0 %1731 }
 0x3a9   : > { %v1795_v37 = vadd.f32 %v1794_v14, %v1732_v43 }
 0x3aa   : > { %v1762_v26 = vpop.xlane.xlu1 %1761 }
 0x3ab   : > { %v1796_v34 = vrot.slane %v1795_v37, 4  ;;  %v1810_v30 = vadd.f32 %v1809_v47, %v1762_v26 }
 0x3ad   : > { %v1797_v3 = vadd.f32 %v1796_v34, %v1795_v37 }
 0x3ae   : > { %v1765_v51 = vpop.xlane.xlu1 %1764 }
 0x3af   : > { %v1798_v50 = vrot.slane %v1797_v3, 2  ;;  %v1811_v8 = vadd.f32 %v1810_v30, %v1765_v51 }
 0x3b1   : > { %v1799_v9 = vadd.f32 %v1798_v50, %v1797_v3 }
 0x3b2   : > { %v1768_v10 = vpop.xlane.xlu1 %1767 }
 0x3b3   : > { %v1800_v38 = vrot.slane %v1799_v9, 1  ;;  %v1812_v4 = vadd.f32 %v1811_v8, %v1768_v10 }
 0x3b5   : > { %v1801_v17 = vadd.f32 %v1800_v38, %v1799_v9 }
 0x3b6   : > { %v1771_v24 = vpop.xlane.xlu1 %1770 }
 0x3b7   : > { %v1823_v32 = vmax.f32 %v1801_v17, 1e-24  ;;  %v1813_v45 = vadd.f32 %v1812_v4, %v1771_v24 }
 0x3b9   : > { %2160 = vrsqrt.f32 %v1823_v32 }
 0x3ba   : > { %v1774_v40 = vpop.xlane.xlu1 %1773 }
 0x3bb   : > { %v1814_v60 = vadd.f32 %v1813_v45, %v1774_v40 }
 0x3be   : > { %v1777_v21 = vpop.xlane.xlu1 %1776 }
 0x3bf   : > { %v1815_v20 = vadd.f32 %v1814_v60, %v1777_v21 }
 0x3c3   : > { %v2161_v1 = vpop.eup %2160 }
 0x3c4   : > { %v1827_v14 = vmul.f32 %v2161_v1, %v3231_v59  ;;  %v1828_v43 = vmul.f32 %v2161_v1, %v3227_v54  ;;  %v1829_v25 = vmul.f32 %v2161_v1, %v3294_v56  ;;  %v1830_v37 = vmul.f32 %v2161_v1, %v3235_v15 }
 0x3c5   : > { %v1831_v62 = vmul.f32 %v2161_v1, %v3247_v0  ;;  %v1832_v35 = vmul.f32 %v2161_v1, %v3254_v39  ;;  %v1833_v34 = vmul.f32 %v2161_v1, %v3261_v6  ;;  %v1834_v33 = vmul.f32 %v2161_v1, %v3268_v19  ;;  %v1780_v0 = vpop.xlane.xlu1 %1779 }
 0x3c6   : > { %v1835_v3 = vmul.f32 %v2161_v1, %v3287_v53  ;;  %v1836_v54 = vmul.f32 %v2161_v1, %v3301_v52  ;;  %v1837_v59 = vmul.f32 %v2161_v1, %v3315_v11  ;;  %v1838_v15 = vmul.f32 %v2161_v1, %v3329_v23  ;;  %1859 = vst.msk [vmem:[%s3455_s15] sm:$0xff] %vm217_vm2, %v1827_v14 }
 0x3c7   : > { %1860 = vst.msk [vmem:[%s3455_s15 + $0x8] sm:$0xff] %vm217_vm2, %v1828_v43  ;;  %1861 = vst.msk [vmem:[%s3455_s15 + $0x10] sm:$0xff] %vm217_vm2, %v1829_v25  ;;  %v1839_v39 = vmul.f32 %v2161_v1, %v3343_v42  ;;  %v1840_v6 = vmul.f32 %v2161_v1, %v3357_v31  ;;  %v1841_v19 = vmul.f32 %v2161_v1, %v3371_v61 }
 0x3c8   : > { %1862 = vst.msk [vmem:[%s3455_s15 + $0x18] sm:$0xff] %vm217_vm2, %v1830_v37  ;;  %v1842_v53 = vmul.f32 %v2161_v1, %v3385_v49  ;;  %1863 = vst.msk [vmem:[%s3455_s15 + $0x20] sm:$0xff] %vm217_vm2, %v1831_v62  ;;  %v1816_v56 = vadd.f32 %v1815_v20, %v1780_v0 }
 0x3c9   : > { %1864 = vst.msk [vmem:[%s3455_s15 + $0x28] sm:$0xff] %vm217_vm2, %v1832_v35  ;;  %1865 = vst.msk [vmem:[%s3455_s15 + $0x30] sm:$0xff] %vm217_vm2, %v1833_v34 }
 0x3ca   : > { %1866 = vst.msk [vmem:[%s3455_s15 + $0x38] sm:$0xff] %vm217_vm2, %v1834_v33  ;;  %1867 = vst.msk [vmem:[%s3455_s15 + $0x40] sm:$0xff] %vm217_vm2, %v1835_v3  ;;  %v1817_v52 = vrot.slane %v1816_v56, 4 }
 0x3cb   : > { %1868 = vst.msk [vmem:[%s3455_s15 + $0x48] sm:$0xff] %vm217_vm2, %v1836_v54  ;;  %1869 = vst.msk [vmem:[%s3455_s15 + $0x50] sm:$0xff] %vm217_vm2, %v1837_v59 }
 0x3cc   : > { %1870 = vst.msk [vmem:[%s3455_s15 + $0x58] sm:$0xff] %vm217_vm2, %v1838_v15  ;;  %1871 = vst.msk [vmem:[%s3455_s15 + $0x60] sm:$0xff] %vm217_vm2, %v1839_v39  ;;  %v1818_v11 = vadd.f32 %v1817_v52, %v1816_v56 }
 0x3cd   : > { %1872 = vst.msk [vmem:[%s3455_s15 + $0x68] sm:$0xff] %vm217_vm2, %v1840_v6  ;;  %1873 = vst.msk [vmem:[%s3455_s15 + $0x70] sm:$0xff] %vm217_vm2, %v1841_v19 }
 0x3ce   : > { %1874 = vst.msk [vmem:[%s3455_s15 + $0x78] sm:$0xff] %vm217_vm2, %v1842_v53  ;;  %v1819_v23 = vrot.slane %v1818_v11, 2 }
 0x3d0   : > { %v1820_v42 = vadd.f32 %v1819_v23, %v1818_v11 }
 0x3d2   : > { %v1821_v31 = vrot.slane %v1820_v42, 1 }
 0x3d4   : > { %v1822_v61 = vadd.f32 %v1821_v31, %v1820_v42 }
 0x3d6   : > { %v1824_v49 = vmax.f32 %v1822_v61, 1e-24 }
 0x3d8   : > { %2162 = vrsqrt.f32 %v1824_v49 }
 0x3e2   : > { %v2163_v26 = vpop.eup %2162 }
 0x3e3   : > { %v1843_v46 = vmul.f32 %v2163_v26, %v3274_v36  ;;  %v1844_v50 = vmul.f32 %v2163_v26, %v3278_v16  ;;  %v1845_v5 = vmul.f32 %v2163_v26, %v3308_v2  ;;  %v1846_v9 = vmul.f32 %v2163_v26, %v3322_v41 }
 0x3e4   : > { %v1847_v51 = vmul.f32 %v2163_v26, %v3336_v48  ;;  %v1848_v44 = vmul.f32 %v2163_v26, %v3350_v13  ;;  %v1849_v38 = vmul.f32 %v2163_v26, %v3364_v7  ;;  %v1850_v12 = vmul.f32 %v2163_v26, %v3378_v28 }
 0x3e5   : > { %v1851_v36 = vmul.f32 %v2163_v26, %v3392_v58  ;;  %v1852_v16 = vmul.f32 %v2163_v26, %v3402_v55  ;;  %v1853_v2 = vmul.f32 %v2163_v26, %v3410_v27  ;;  %v1854_v41 = vmul.f32 %v2163_v26, %v3417_v22  ;;  %1875 = vst.msk [vmem:[%s3455_s15 + $0x80] sm:$0xff] %vm217_vm2, %v1843_v46 }
 0x3e6   : > { %1876 = vst.msk [vmem:[%s3455_s15 + $0x88] sm:$0xff] %vm217_vm2, %v1844_v50  ;;  %1877 = vst.msk [vmem:[%s3455_s15 + $0x90] sm:$0xff] %vm217_vm2, %v1845_v5  ;;  %v1855_v48 = vmul.f32 %v2163_v26, %v3424_v29  ;;  %v1856_v13 = vmul.f32 %v2163_v26, %v3431_v57  ;;  %v1857_v7 = vmul.f32 %v2163_v26, %v3438_v63 }
 0x3e7   : > { %1878 = vst.msk [vmem:[%s3455_s15 + $0x98] sm:$0xff] %vm217_vm2, %v1846_v9  ;;  %v1858_v28 = vmul.f32 %v2163_v26, %v3445_v18  ;;  %1879 = vst.msk [vmem:[%s3455_s15 + $0xa0] sm:$0xff] %vm217_vm2, %v1847_v51 }
 0x3e8   : > { %1880 = vst.msk [vmem:[%s3455_s15 + $0xa8] sm:$0xff] %vm217_vm2, %v1848_v44  ;;  %1881 = vst.msk [vmem:[%s3455_s15 + $0xb0] sm:$0xff] %vm217_vm2, %v1849_v38 }
 0x3e9   : > { %1882 = vst.msk [vmem:[%s3455_s15 + $0xb8] sm:$0xff] %vm217_vm2, %v1850_v12  ;;  %1883 = vst.msk [vmem:[%s3455_s15 + $0xc0] sm:$0xff] %vm217_vm2, %v1851_v36 }
 0x3ea   : > { %1884 = vst.msk [vmem:[%s3455_s15 + $0xc8] sm:$0xff] %vm217_vm2, %v1852_v16  ;;  %1885 = vst.msk [vmem:[%s3455_s15 + $0xd0] sm:$0xff] %vm217_vm2, %v1853_v2 }
 0x3eb   : > { %1886 = vst.msk [vmem:[%s3455_s15 + $0xd8] sm:$0xff] %vm217_vm2, %v1854_v41  ;;  %1887 = vst.msk [vmem:[%s3455_s15 + $0xe0] sm:$0xff] %vm217_vm2, %v1855_v48 }
 0x3ec   : > { %1888 = vst.msk [vmem:[%s3455_s15 + $0xe8] sm:$0xff] %vm217_vm2, %v1856_v13  ;;  %1889 = vst.msk [vmem:[%s3455_s15 + $0xf0] sm:$0xff] %vm217_vm2, %v1857_v7 }
 0x3ed   : > { %1890 = vst.msk [vmem:[%s3455_s15 + $0xf8] sm:$0xff] %vm217_vm2, %v1858_v28 }
 0x3ee PF: > { %s16_s17 = sadd.s32 1, %s2244_s17   ;;  %s3684_s12 = smov %s2228_s13 }
 0x3ef   : > { %p13_p9 = scmp.ge.s32.totalorder %s16_s17, 6   ;;  %s3685_s13 = smov %s2232_s14 }
 0x3f0   : > { %s3686_s14 = smov %s2321_s24  ;;  %s3687_s15 = smov %s2240_s16 }
 0x3f1   : > { %s3688_s16 = smov %s3690_s19  ;;  %15 = sbr.rel (!%p13_p9) target bundleno = 4 (0x4), region = 80 }
 0x3f8   :  { %1915 = vsyncpa [#allocation5], 1 }
 0x3f9   :  { %1917 = vsyncpa [#allocation5 + $0x1], 1 }

</bundles_post_ra>
